<compile_context>
chip_gen: v7x
topology: tpu7x:2x2x1
jax: 0.10.0
libtpu: 0.0.40
codegen_flags: <defaults>
</compile_context>

<pallas_src>
import functools

import jax
import jax.numpy as jnp
from jax.experimental import pallas as pl
from jax.experimental.pallas import tpu as pltpu


# ----------------------------------------------------------------------------
# Kernel 1: 3x3x3 Conv3d (padding=1) as ONE im2col matmul per (batch, N-tile)
# ----------------------------------------------------------------------------
def _conv3d_kernel(xa_ref, xb_ref, w_ref, b_ref, out_ref, *, offs, tile_n):
    # xa_ref / xb_ref: (1, Cin_p, tile_n) -- two adjacent windows of the
    #   flattened zero-padded input volume (xb is the "+1" block = halo).
    # w_ref: (C, 27*Cin_p) im2col weights, b_ref: (C, 1), out_ref: (1, C, tile_n)
    chunk = jnp.concatenate([xa_ref[0], xb_ref[0]], axis=1)          # (Cin_p, 2*tile_n)
    # 27 static shifted windows -> im2col matrix (27*Cin_p, tile_n)
    taps = jnp.concatenate([chunk[:, o:o + tile_n] for o in offs], axis=0)
    acc = jnp.dot(w_ref[...], taps, preferred_element_type=jnp.float32)
    out_ref[0] = (acc + b_ref[...]).astype(out_ref.dtype)


def conv3d_3x3x3(x_ncdhw, w_oidhw, b, tile_n=512):
    """3D conv, kernel 3, stride 1, padding 1.  Returns (B, Cout, N=D*H*W)."""
    B, Cin, D, H, W = x_ncdhw.shape
    Cout = w_oidhw.shape[0]
    Dp, Hp, Wp = D + 2, H + 2, W + 2
    Cin_p = ((Cin + 7) // 8) * 8                       # sublane-align the taps
    # flat-shift offsets of the 27 taps inside the padded volume
    offs = [(kd * Hp + kh) * Wp + kw
            for kd in range(3) for kh in range(3) for kw in range(3)]
    max_off = offs[-1]
    tile_n = max(tile_n, ((max_off + 127) // 128) * 128)   # halo must fit in one tile
    n_pad_grid = Dp * Hp * Wp
    n_tiles = (n_pad_grid + tile_n - 1) // tile_n
    n_out = n_tiles * tile_n

    # glue (pure data movement): channel pad, spatial halo pad, flatten, tail pad
    xp = jnp.pad(x_ncdhw, ((0, 0), (0, Cin_p - Cin), (1, 1), (1, 1), (1, 1)))
    xf = xp.reshape(B, Cin_p, n_pad_grid)
    xf = jnp.pad(xf, ((0, 0), (0, 0), (0, (n_tiles + 1) * tile_n - n_pad_grid)))

    wm = jnp.transpose(w_oidhw, (0, 2, 3, 4, 1))       # (C, 3, 3, 3, Cin)
    wm = jnp.pad(wm, ((0, 0), (0, 0), (0, 0), (0, 0), (0, Cin_p - Cin)))
    wm = wm.reshape(Cout, 27 * Cin_p)
    b2 = b.reshape(Cout, 1)

    kernel = functools.partial(_conv3d_kernel, offs=offs, tile_n=tile_n)
    out = pl.pallas_call(
        kernel,
        out_shape=jax.ShapeDtypeStruct((B, Cout, n_out), x_ncdhw.dtype),
        grid=(B, n_tiles),
        in_specs=[
            pl.BlockSpec((1, Cin_p, tile_n), lambda bi, j: (bi, 0, j)),
            pl.BlockSpec((1, Cin_p, tile_n), lambda bi, j: (bi, 0, j + 1)),
            pl.BlockSpec((Cout, 27 * Cin_p), lambda bi, j: (0, 0)),
            pl.BlockSpec((Cout, 1), lambda bi, j: (0, 0)),
        ],
        out_specs=pl.BlockSpec((1, Cout, tile_n), lambda bi, j: (bi, 0, j)),
        compiler_params=pltpu.CompilerParams(
            dimension_semantics=("parallel", "parallel"),
            vmem_limit_bytes=32 * 1024 * 1024),
    )(xf, xf, wm, b2)

    # discard halo / rounding positions (pure slicing, fuses into mp stacking)
    out = out[:, :, :n_pad_grid].reshape(B, Cout, Dp, Hp, Wp)[:, :, :D, :H, :W]
    return out.reshape(B, Cout, D * H * W)


# ----------------------------------------------------------------------------
# Kernel 2: fused polarized channel + spatial multi-scale attention
#           (channels-first, lane-dense (C, N) layout)
# ----------------------------------------------------------------------------
def _pmfs_attention_kernel(mp_ref, w_ref, b_ref, wz_w_ref, wz_b_ref,
                           ln_g_ref, ln_b_ref, out_ref):
    # mp_ref : (1, K, C, N)   multi-scale maps (channel-zero-padded), lane-dense
    # w_ref  : (K, P, C)      fused rows [ch_q(IC) | ch_k(1) | sp_q(IC) | sp_k(IC)]
    # b_ref  : (K, P, 1)      matching biases (BN folded)
    # wz_w   : (C, IC), wz_b/ln_g/ln_b : (C, 1), out_ref: (1, C, N)
    K = mp_ref.shape[1]
    N = mp_ref.shape[3]
    P = w_ref.shape[1]
    IC = (P - 1) // 3
    f32 = jnp.float32
    ones_row = jnp.ones((1, N), f32)

    mp = mp_ref[0]                                               # (K, C, N)

    # ---- fused per-scale 1x1x1 projections: ONE batched MXU matmul ----------
    # (scale-0 spatial rows computed here are discarded; they are re-projected
    #  after channel gating because ReLU is nonlinear.)
    proj = jnp.maximum(
        jnp.einsum('kpc,kcn->kpn', w_ref[...], mp,
                   preferred_element_type=f32) + b_ref[...], 0.0)   # (K, P, N)

    # ---- channel branch: global softmax over (scale, position) + inner prod
    q_flat = jnp.concatenate([proj[i, :IC] for i in range(K)], axis=1)       # (IC, K*N)
    k_flat = jnp.concatenate([proj[i, IC:IC + 1] for i in range(K)], axis=1)  # (1, K*N)
    m = jnp.max(k_flat, axis=1, keepdims=True)
    e = jnp.exp(k_flat - m)                                      # (1, K*N)
    den = jnp.sum(e, axis=1, keepdims=True)
    z = jnp.einsum('cn,on->co', q_flat, e,
                   preferred_element_type=f32)                   # (IC, 1) on MXU
    z = z * pl.reciprocal(den, approx=True)                      # softmax normalizer

    wz = jnp.dot(wz_w_ref[...], z, preferred_element_type=f32) + wz_b_ref[...]
    mu = jnp.mean(wz, axis=0, keepdims=True)
    var = jnp.mean((wz - mu) ** 2, axis=0, keepdims=True)
    ln = (wz - mu) * jax.lax.rsqrt(var + 1e-5) * ln_g_ref[...] + ln_b_ref[...]
    ch_score = jax.nn.sigmoid(ln)                                # (C, 1)
    x0 = mp[0] * ch_score                                        # (C, N) gated

    # ---- spatial branch -----------------------------------------------------
    # scale-0 spatial projections on the gated map (one extra small matmul)
    proj0 = jnp.maximum(
        jnp.dot(w_ref[0, IC + 1:], x0, preferred_element_type=f32)
        + b_ref[0, IC + 1:], 0.0)                                # (2*IC, N)
    sp_q_all = jnp.concatenate(
        [proj0[:IC]] + [proj[i, IC + 1:2 * IC + 1] for i in range(1, K)], axis=0)
    sp_k_all = jnp.concatenate(
        [proj0[IC:]] + [proj[i, 2 * IC + 1:] for i in range(1, K)], axis=0)

    # mean-pooled keys over N as one lane-dense MXU matvec, softmax over K*IC
    k_row = jnp.einsum('on,cn->oc', ones_row, sp_k_all,
                       preferred_element_type=f32) * (1.0 / N)   # (1, K*IC)
    ek = jnp.exp(k_row - jnp.max(k_row, axis=1, keepdims=True))
    w_row = ek * pl.reciprocal(jnp.sum(ek, axis=1, keepdims=True), approx=True)

    # softmax-weighted sum over (scale, inner-channel): one MXU matvec
    sp_z = jnp.dot(w_row, sp_q_all, preferred_element_type=f32)  # (1, N)
    out_ref[0] = (x0 * jax.nn.sigmoid(sp_z)).astype(out_ref.dtype)


def pmfs_attention(mp_stack, params):
    B, K, C, N = mp_stack.shape
    P = params["proj_w"].shape[1]
    IC = params["chwz_w"].shape[1]
    # explicit VMEM budget: scales with the per-batch block, capped well below
    # v7x's 64 MiB physical VMEM (v5e/v6e have 128 MiB and tolerate more).
    block_bytes = K * C * N * 4
    vmem_limit = int(min(48 * 2 ** 20, max(32 * 2 ** 20, 5 * block_bytes)))
    return pl.pallas_call(
        _pmfs_attention_kernel,
        out_shape=jax.ShapeDtypeStruct((B, C, N), mp_stack.dtype),
        grid=(B,),
        in_specs=[
            pl.BlockSpec((1, K, C, N), lambda b: (b, 0, 0, 0)),
            pl.BlockSpec((K, P, C), lambda b: (0, 0, 0)),
            pl.BlockSpec((K, P, 1), lambda b: (0, 0, 0)),
            pl.BlockSpec((C, IC), lambda b: (0, 0)),
            pl.BlockSpec((C, 1), lambda b: (0, 0)),
            pl.BlockSpec((C, 1), lambda b: (0, 0)),
            pl.BlockSpec((C, 1), lambda b: (0, 0)),
        ],
        out_specs=pl.BlockSpec((1, C, N), lambda b: (b, 0, 0)),
        compiler_params=pltpu.CompilerParams(
            dimension_semantics=("parallel",),
            vmem_limit_bytes=vmem_limit),
    )(mp_stack, params["proj_w"], params["proj_b"], params["chwz_w"],
      params["chwz_b"], params["ln_g"], params["ln_b"])


# ----------------------------------------------------------------------------
# Full forward (glue + Pallas kernels) -- channels-first end to end
# ----------------------------------------------------------------------------
def pmfs_forward(feature_maps, params, channel, feature_num):
    B = feature_maps[0].shape[0]
    D, H, W = feature_maps[0].shape[2:]
    N = D * H * W

    # basic 3x3x3 conv on the coarsest-resolution map (Pallas kernel)
    x0 = conv3d_3x3x3(feature_maps[0], params["basic_w"], params["basic_b"])  # (B,C,N)

    # MaxPool3d(2**i) on the finer-resolution maps: pure data movement (glue)
    mps = [x0]
    for i in range(1, feature_num):
        p = 2 ** i
        fm = feature_maps[i]                                   # (B, Ci, D*p, H*p, W*p)
        Ci = fm.shape[1]
        pooled = fm.reshape(B, Ci, D, p, H, p, W, p).max(axis=(3, 5, 7))
        pooled = pooled.reshape(B, Ci, N)
        pooled = jnp.pad(pooled, ((0, 0), (0, channel - Ci), (0, 0)))   # zero channels
        mps.append(pooled)
    mp_stack = jnp.stack(mps, axis=1)                          # (B, K, C, N) lane-dense

    out = pmfs_attention(mp_stack, params)                     # (B, C, N)
    return out.reshape(B, channel, D, H, W)


# ----------------------------------------------------------------------------
# Deterministic parameter initialization (BN folded, eval-mode semantics)
# ----------------------------------------------------------------------------
def init_params(key, in_channel, channel, feature_num, r):
    inner_c = channel // (feature_num * r)
    keys = iter(jax.random.split(key, 128))

    def nrm(shape, s=0.1):
        return s * jax.random.normal(next(keys), shape, jnp.float32)

    def unif(shape, lo, hi):
        return jax.random.uniform(next(keys), shape, jnp.float32, lo, hi)

    def folded_1x1(out_c, ci):
        # conv (out, ci) + BN(out) folded, kept row-major (out, in)
        w = nrm((out_c, ci), 0.2)
        b = nrm((out_c,), 0.1)
        g = unif((out_c,), 0.5, 1.5)
        beta = nrm((out_c,), 0.1)
        mean = nrm((out_c,), 0.1)
        var = unif((out_c,), 0.5, 1.5)
        scale = g / jnp.sqrt(var + 1e-5)
        return w * scale[:, None], (b - mean) * scale + beta

    p = {}
    p["basic_w"] = nrm((channel, in_channel, 3, 3, 3), 0.2)
    p["basic_b"] = nrm((channel,), 0.1)

    pw, pb = [], []
    for i in range(feature_num):
        ci = channel // (2 ** i)
        rows_w, rows_b = [], []
        for out_c in (inner_c, 1, inner_c, inner_c):   # [ch_q | ch_k | sp_q | sp_k]
            wf, bf = folded_1x1(out_c, ci)
            rows_w.append(jnp.pad(wf, ((0, 0), (0, channel - ci))))   # zero-pad columns
            rows_b.append(bf)
        pw.append(jnp.concatenate(rows_w, axis=0))     # (P, C)
        pb.append(jnp.concatenate(rows_b, axis=0))     # (P,)
    p["proj_w"] = jnp.stack(pw, 0)                     # (K, P, C)
    p["proj_b"] = jnp.stack(pb, 0)[..., None]          # (K, P, 1)

    p["chwz_w"] = nrm((channel, inner_c), 0.2)         # (out, in)
    p["chwz_b"] = nrm((channel, 1), 0.1)
    p["ln_g"] = unif((channel, 1), 0.5, 1.5)
    p["ln_b"] = nrm((channel, 1), 0.1)
    return p, inner_c


# ----------------------------------------------------------------------------
# Pure-JAX reference (mirrors the PyTorch forward, NCDHW) for validation
# ----------------------------------------------------------------------------
def reference_forward(feature_maps, params, channel, feature_num):
    fm0 = jax.lax.conv_general_dilated(
        feature_maps[0], params["basic_w"], window_strides=(1, 1, 1),
        padding=((1, 1), (1, 1), (1, 1)),
        dimension_numbers=("NCDHW", "OIDHW", "NCDHW"))
    fm0 = fm0 + params["basic_b"].reshape(1, -1, 1, 1, 1)
    B, C, D, H, W = fm0.shape
    N = D * H * W
    K = feature_num
    P = params["proj_w"].shape[1]
    IC = (P - 1) // 3

    mps = [fm0]
    for i in range(1, K):
        p = 2 ** i
        fm = feature_maps[i]
        Ci = fm.shape[1]
        mps.append(fm.reshape(B, Ci, D, p, H, p, W, p).max(axis=(3, 5, 7)))

    def proj(x, w, b):
        Ci = x.shape[1]
        y = jnp.einsum("bcdhw,oc->bodhw", x, w[:, :Ci]) + b.reshape(1, -1, 1, 1, 1)
        return jnp.maximum(y, 0.0)

    # channel branch
    ch_Wq = jnp.stack([proj(mps[i], params["proj_w"][i, :IC],
                            params["proj_b"][i, :IC, 0]) for i in range(K)],
                      axis=-1).reshape(B, IC, -1)
    ch_Wk = jnp.stack([proj(mps[i], params["proj_w"][i, IC:IC + 1],
                            params["proj_b"][i, IC:IC + 1, 0]) for i in range(K)],
                      axis=-1).reshape(B, -1, 1)
    ch_Wk = jax.nn.softmax(ch_Wk, axis=1)
    ch_Wz = jnp.matmul(ch_Wq, ch_Wk).reshape(B, IC)
    wz = jnp.einsum("bi,ci->bc", ch_Wz, params["chwz_w"]) + params["chwz_b"].reshape(1, C)
    mu = wz.mean(axis=1, keepdims=True)
    var = ((wz - mu) ** 2).mean(axis=1, keepdims=True)
    ln = (wz - mu) / jnp.sqrt(var + 1e-5) * params["ln_g"].reshape(1, C) \
        + params["ln_b"].reshape(1, C)
    ch_score = jax.nn.sigmoid(ln).reshape(B, C, 1, 1, 1)
    mps[0] = ch_score * mps[0]

    # spatial branch
    sp_Wq = jnp.stack([proj(mps[i], params["proj_w"][i, IC + 1:2 * IC + 1],
                            params["proj_b"][i, IC + 1:2 * IC + 1, 0])
                       for i in range(K)], axis=1).reshape(B, K * IC, N)
    sp_Wk = jnp.stack([proj(mps[i], params["proj_w"][i, 2 * IC + 1:],
                            params["proj_b"][i, 2 * IC + 1:, 0])
                       for i in range(K)], axis=1)
    sp_Wk = sp_Wk.mean(-1).mean(-1).mean(-1).reshape(B, 1, K * IC)
    sp_Wk = jax.nn.softmax(sp_Wk, axis=-1)
    sp_Wz = jnp.matmul(sp_Wk, sp_Wq)
    sp_score = jax.nn.sigmoid(sp_Wz.reshape(B, 1, D, H, W))
    return sp_score * mps[0]


# ----------------------------------------------------------------------------
if __name__ == "__main__":
    key = jax.random.PRNGKey(0)
    B = 2
    in_channel = 6
    channel = 48
    feature_num = 3       # max_pool sizes [1, 2, 4]
    r = 4                 # inner_c = 48 // 12 = 4
    D = H = W = 8         # N = 512 (lane-dense)

    k_par, k_in = jax.random.split(key)
    params, inner_c = init_params(k_par, in_channel, channel, feature_num, r)

    fkeys = jax.random.split(k_in, feature_num)
    feature_maps = [jax.random.normal(fkeys[0], (B, in_channel, D, H, W), jnp.float32)]
    for i in range(1, feature_num):
        p = 2 ** i
        feature_maps.append(jax.random.normal(
            fkeys[i], (B, channel // p, D * p, H * p, W * p), jnp.float32))

    out = pmfs_forward(feature_maps, params, channel, feature_num)
    out = jax.block_until_ready(out)

    ref = reference_forward(feature_maps, params, channel, feature_num)
    err = float(jnp.max(jnp.abs(out - ref)))
    assert out.shape == (B, channel, D, H, W), out.shape
    # tolerance allows for the EUP approximate-reciprocal softmax normalizers
    # and matmul reassociation; typical observed error is ~1e-4.
    assert err < 2e-3, f"max abs error vs reference: {err}"
    print("KERNEL_OK")
</pallas_src>

<mosaic_0001>
module attributes {stable_mosaic.version = 11 : i64} {
  func.func @_conv3d_kernel(%arg0: i32, %arg1: i32, %arg2: memref<1x8x512xf32, #tpu.memory_space<vmem>>, %arg3: memref<1x8x512xf32, #tpu.memory_space<vmem>>, %arg4: memref<48x216xf32, #tpu.memory_space<vmem>>, %arg5: memref<48x1xf32, #tpu.memory_space<vmem>>, %arg6: memref<1x48x512xf32, #tpu.memory_space<vmem>>) attributes {dimension_semantics = [#tpu.dimension_semantics<parallel>, #tpu.dimension_semantics<parallel>], iteration_bounds = array<i64: 2, 2>, scalar_prefetch = 0 : i64, scratch_operands = 0 : i64, tpu.core_type = #tpu.core_type<tc>, window_params = [{transform_indices = @transform_0, window_bounds = array<i64: 1, 8, 512>}, {transform_indices = @transform_1, window_bounds = array<i64: 1, 8, 512>}, {pipeline_mode = #tpu.pipeline_mode<synchronous>, transform_indices = @transform_2, window_bounds = array<i64: 48, 216>}, {pipeline_mode = #tpu.pipeline_mode<synchronous>, transform_indices = @transform_3, window_bounds = array<i64: 48, 1>}, {transform_indices = @transform_4, window_bounds = array<i64: 1, 48, 512>}]} {
    %c0 = arith.constant 0 : index
    %c0_0 = arith.constant 0 : index
    %c0_1 = arith.constant 0 : index
    %0 = vector.load %arg2[%c0, %c0_0, %c0_1] : memref<1x8x512xf32, #tpu.memory_space<vmem>>, vector<1x8x512xf32>
    %1 = vector.shape_cast %0 : vector<1x8x512xf32> to vector<8x512xf32>
    %c0_2 = arith.constant 0 : index
    %c0_3 = arith.constant 0 : index
    %c0_4 = arith.constant 0 : index
    %2 = vector.load %arg3[%c0_2, %c0_3, %c0_4] : memref<1x8x512xf32, #tpu.memory_space<vmem>>, vector<1x8x512xf32>
    %3 = vector.shape_cast %2 : vector<1x8x512xf32> to vector<8x512xf32>
    %4 = tpu.concatenate %1, %3 in 1 : vector<8x512xf32>, vector<8x512xf32> -> vector<8x1024xf32>
    %5 = vector.extract_strided_slice %4 {offsets = [0, 0], sizes = [8, 512], strides = [1, 1]} : vector<8x1024xf32> to vector<8x512xf32>
    %6 = vector.extract_strided_slice %4 {offsets = [0, 1], sizes = [8, 512], strides = [1, 1]} : vector<8x1024xf32> to vector<8x512xf32>
    %7 = vector.extract_strided_slice %4 {offsets = [0, 2], sizes = [8, 512], strides = [1, 1]} : vector<8x1024xf32> to vector<8x512xf32>
    %8 = vector.extract_strided_slice %4 {offsets = [0, 10], sizes = [8, 512], strides = [1, 1]} : vector<8x1024xf32> to vector<8x512xf32>
    %9 = vector.extract_strided_slice %4 {offsets = [0, 11], sizes = [8, 512], strides = [1, 1]} : vector<8x1024xf32> to vector<8x512xf32>
    %10 = vector.extract_strided_slice %4 {offsets = [0, 12], sizes = [8, 512], strides = [1, 1]} : vector<8x1024xf32> to vector<8x512xf32>
    %11 = vector.extract_strided_slice %4 {offsets = [0, 20], sizes = [8, 512], strides = [1, 1]} : vector<8x1024xf32> to vector<8x512xf32>
    %12 = vector.extract_strided_slice %4 {offsets = [0, 21], sizes = [8, 512], strides = [1, 1]} : vector<8x1024xf32> to vector<8x512xf32>
    %13 = vector.extract_strided_slice %4 {offsets = [0, 22], sizes = [8, 512], strides = [1, 1]} : vector<8x1024xf32> to vector<8x512xf32>
    %14 = vector.extract_strided_slice %4 {offsets = [0, 100], sizes = [8, 512], strides = [1, 1]} : vector<8x1024xf32> to vector<8x512xf32>
    %15 = vector.extract_strided_slice %4 {offsets = [0, 101], sizes = [8, 512], strides = [1, 1]} : vector<8x1024xf32> to vector<8x512xf32>
    %16 = vector.extract_strided_slice %4 {offsets = [0, 102], sizes = [8, 512], strides = [1, 1]} : vector<8x1024xf32> to vector<8x512xf32>
    %17 = vector.extract_strided_slice %4 {offsets = [0, 110], sizes = [8, 512], strides = [1, 1]} : vector<8x1024xf32> to vector<8x512xf32>
    %18 = vector.extract_strided_slice %4 {offsets = [0, 111], sizes = [8, 512], strides = [1, 1]} : vector<8x1024xf32> to vector<8x512xf32>
    %19 = vector.extract_strided_slice %4 {offsets = [0, 112], sizes = [8, 512], strides = [1, 1]} : vector<8x1024xf32> to vector<8x512xf32>
    %20 = vector.extract_strided_slice %4 {offsets = [0, 120], sizes = [8, 512], strides = [1, 1]} : vector<8x1024xf32> to vector<8x512xf32>
    %21 = vector.extract_strided_slice %4 {offsets = [0, 121], sizes = [8, 512], strides = [1, 1]} : vector<8x1024xf32> to vector<8x512xf32>
    %22 = vector.extract_strided_slice %4 {offsets = [0, 122], sizes = [8, 512], strides = [1, 1]} : vector<8x1024xf32> to vector<8x512xf32>
    %23 = vector.extract_strided_slice %4 {offsets = [0, 200], sizes = [8, 512], strides = [1, 1]} : vector<8x1024xf32> to vector<8x512xf32>
    %24 = vector.extract_strided_slice %4 {offsets = [0, 201], sizes = [8, 512], strides = [1, 1]} : vector<8x1024xf32> to vector<8x512xf32>
    %25 = vector.extract_strided_slice %4 {offsets = [0, 202], sizes = [8, 512], strides = [1, 1]} : vector<8x1024xf32> to vector<8x512xf32>
    %26 = vector.extract_strided_slice %4 {offsets = [0, 210], sizes = [8, 512], strides = [1, 1]} : vector<8x1024xf32> to vector<8x512xf32>
    %27 = vector.extract_strided_slice %4 {offsets = [0, 211], sizes = [8, 512], strides = [1, 1]} : vector<8x1024xf32> to vector<8x512xf32>
    %28 = vector.extract_strided_slice %4 {offsets = [0, 212], sizes = [8, 512], strides = [1, 1]} : vector<8x1024xf32> to vector<8x512xf32>
    %29 = vector.extract_strided_slice %4 {offsets = [0, 220], sizes = [8, 512], strides = [1, 1]} : vector<8x1024xf32> to vector<8x512xf32>
    %30 = vector.extract_strided_slice %4 {offsets = [0, 221], sizes = [8, 512], strides = [1, 1]} : vector<8x1024xf32> to vector<8x512xf32>
    %31 = vector.extract_strided_slice %4 {offsets = [0, 222], sizes = [8, 512], strides = [1, 1]} : vector<8x1024xf32> to vector<8x512xf32>
    %32 = tpu.concatenate %5, %6, %7, %8, %9, %10, %11, %12, %13, %14, %15, %16, %17, %18, %19, %20 in 0 : vector<8x512xf32>, vector<8x512xf32>, vector<8x512xf32>, vector<8x512xf32>, vector<8x512xf32>, vector<8x512xf32>, vector<8x512xf32>, vector<8x512xf32>, vector<8x512xf32>, vector<8x512xf32>, vector<8x512xf32>, vector<8x512xf32>, vector<8x512xf32>, vector<8x512xf32>, vector<8x512xf32>, vector<8x512xf32> -> vector<128x512xf32>
    %33 = tpu.concatenate %21, %22, %23, %24, %25, %26, %27, %28, %29, %30, %31 in 0 : vector<8x512xf32>, vector<8x512xf32>, vector<8x512xf32>, vector<8x512xf32>, vector<8x512xf32>, vector<8x512xf32>, vector<8x512xf32>, vector<8x512xf32>, vector<8x512xf32>, vector<8x512xf32>, vector<8x512xf32> -> vector<88x512xf32>
    %34 = tpu.concatenate %32, %33 in 0 : vector<128x512xf32>, vector<88x512xf32> -> vector<216x512xf32>
    %c0_5 = arith.constant 0 : index
    %c0_6 = arith.constant 0 : index
    %35 = vector.load %arg4[%c0_5, %c0_6] : memref<48x216xf32, #tpu.memory_space<vmem>>, vector<48x216xf32>
    %cst = arith.constant dense<0.000000e+00> : vector<48x512xf32>
    %36 = tpu.matmul %35, %34, %cst {dimension_numbers = #tpu.dot_dimension_numbers<[1], [0], [0], [1], [0, 0, 1, 1], [], []>} : vector<48x216xf32>, vector<216x512xf32>, vector<48x512xf32> -> vector<48x512xf32>
    %c0_7 = arith.constant 0 : index
    %c0_8 = arith.constant 0 : index
    %37 = vector.load %arg5[%c0_7, %c0_8] : memref<48x1xf32, #tpu.memory_space<vmem>>, vector<48x1xf32>
    %38 = vector.broadcast %37 : vector<48x1xf32> to vector<48x512xf32>
    %39 = arith.addf %36, %38 : vector<48x512xf32>
    %c0_9 = arith.constant 0 : index
    %c0_10 = arith.constant 0 : index
    %c0_11 = arith.constant 0 : index
    %40 = vector.load %arg6[%c0_9, %c0_10, %c0_11] : memref<1x48x512xf32, #tpu.memory_space<vmem>>, vector<1x48x512xf32>
    %41 = vector.shape_cast %40 : vector<1x48x512xf32> to vector<48x512xf32>
    %42 = vector.shape_cast %39 : vector<48x512xf32> to vector<1x48x512xf32>
    tpu.vector_store %arg6[%c0_9, %c0_10, %c0_11], %42 {strides = array<i32>} : memref<1x48x512xf32, #tpu.memory_space<vmem>>, vector<1x48x512xf32>,
    return
  }
  func.func @transform_0(%arg0: i32, %arg1: i32) -> (i32, i32, i32) {
    %c0_i32 = arith.constant 0 : i32
    %c0_i32_0 = arith.constant 0 : i32
    return %arg0, %c0_i32, %arg1 : i32, i32, i32
  }
  func.func @transform_1(%arg0: i32, %arg1: i32) -> (i32, i32, i32) {
    %c1_i32 = arith.constant 1 : i32
    %0 = arith.addi %arg1, %c1_i32 : i32
    %c0_i32 = arith.constant 0 : i32
    %c0_i32_0 = arith.constant 0 : i32
    return %arg0, %c0_i32, %0 : i32, i32, i32
  }
  func.func @transform_2(%arg0: i32, %arg1: i32) -> (i32, i32) {
    %c0_i32 = arith.constant 0 : i32
    %c0_i32_0 = arith.constant 0 : i32
    %c0_i32_1 = arith.constant 0 : i32
    return %c0_i32, %c0_i32_0 : i32, i32
  }
  func.func @transform_3(%arg0: i32, %arg1: i32) -> (i32, i32) {
    %c0_i32 = arith.constant 0 : i32
    %c0_i32_0 = arith.constant 0 : i32
    %c0_i32_1 = arith.constant 0 : i32
    return %c0_i32, %c0_i32_0 : i32, i32
  }
  func.func @transform_4(%arg0: i32, %arg1: i32) -> (i32, i32, i32) {
    %c0_i32 = arith.constant 0 : i32
    %c0_i32_0 = arith.constant 0 : i32
    return %arg0, %c0_i32, %arg1 : i32, i32, i32
  }
}

</mosaic_0001>

<bundles_post_ra>
// kernel: tpu_custom_call.1
= control target key start
LH: loop header
LB: loop body
LE: loop exit
PB: predicated region body
PF: predicated region fallthrough
CT: control target
= control target key end

     0   :  { %s2989_s0 = inlined_call_operand.hbm [shape: f32[2,8,1536], index: 0, kind: input, shape index: {}]   ;;  %s2990_s1 = inlined_call_operand.hbm [shape: f32[2,8,1536], index: 1, kind: input, shape index: {}]   ;;  %s2991_s2 = inlined_call_operand.hbm [shape: f32[48,216], index: 2, kind: input, shape index: {}]   ;;  %s2992_s3 = inlined_call_operand.vmem [shape: f32[48,1], index: 3, kind: input, shape index: {}]   ;;  %s2993_s4 = inlined_call_operand.hbm [shape: f32[2,48,1024], index: 4, kind: output, shape index: {}]  }
   0x1   :  { %3007 = sst [smem:[#allocation20_spill]] %s2991_s2 }
   0x2   :  { %3008 = sst [smem:[#allocation21_spill]] %s2993_s4 }
   0x3   :  { %9 = vsyncpa [#allocation3], 0 }
   0x4   :  { %11 = vsyncpa [#allocation3 + $0x1], 0 }
   0x5   :  { %12 = vsyncpa [#allocation6], 0 }
   0x6   :  { %14 = vsyncpa [#allocation6 + $0x1], 0 }
   0x7   :  { %15 = vsyncpa [#allocation4], 0 }
   0x8   :  { %17 = vsyncpa [#allocation4 + $0x1], 0  ;;  %s2243_s15 = smov 0   ;;  %s2245_s16 = smov 0  }
   0x9   :  { %s2247_s17 = smov 0   ;;  %s2249_s18 = smov 0  }
   0xa   :  { %s2251_s19 = smov 0   ;;  %s2253_s20 = smov 0  }
   0xb   :  { %s2255_s21 = smov 0   ;;  %s2257_s22 = smov 0  }
   0xc   :  { %s2259_s23 = smov 0   ;;  %s2261_s24 = smov 0  }
   0xd   :  { %s2263_s25 = smov 0  }
   0xe LB: > { %3009 = sst [smem:[#allocation13_spill]] %s2167_s21  ;;  %s2299_s26 = sadd.s32 4294967295, %s2183_s25   ;;  %s2183_s25 = sphi %s2263_s25, %s23_s25   ;;  %s2179_s24 = sphi %s2261_s24, %s3045_s24   ;;  %s2175_s23 = sphi %s2259_s23, %s3044_s23   ;;  %s2171_s22 = sphi %s2257_s22, %s3043_s22   ;;  %s2167_s21 = sphi %s2255_s21, %s3042_s21   ;;  %s2163_s20 = sphi %s2253_s20, %s3051_s20   ;;  %s2159_s19 = sphi %s2251_s19, %s3050_s19   ;;  %s2155_s18 = sphi %s2249_s18, %s3049_s18   ;;  %s2151_s17 = sphi %s2247_s17, %s3048_s17   ;;  %s2147_s16 = sphi %s2245_s16, %s3047_s16   ;;  %s2143_s15 = sphi %s2243_s15, %s3046_s15  }
   0xf   : > { %3010 = sst [smem:[#allocation14_spill]] %s2175_s23  ;;  %p1339_p0 = scmp.ge.s32.totalorder %s2183_s25, 1 }
  0x10   : > { %3011 = sst [smem:[#allocation15_spill]] %s2179_s24  ;;  %p2994_p1 = scmp.eq.s32.totalorder %s2299_s26, 0 }
  0x11   : > { %p168_p2 = scmp.lt.s32.totalorder %s2183_s25, 5  ;;  %s2185_s28 = smov [#allocation7]  }
  0x12   : > { %s180_s29 = sshll.u32 %s2185_s28, 4  ;;  %s3014_s2 = sld [smem:[#allocation20_spill]]  ;;  %s181_s29 = int_to_ptr.vmem [resolvable:$true] %s180_s29 }
  0x13   : > { %p2304_p3 = pnand %p1339_p0, %p168_p2 }
  0x15   : > { %s3012_s27 = scalar_select %p2304_p3, 1, 0 }
  0x16   : > { %p1485_p4 = pneg %p2304_p3 }
  0x18   : > { %p2312_p5 = pnand %p1485_p4, %p2994_p1  ;;  %s1964_s7 = scalar_lea.hbm %s3014_s2, 1536 }
  0x19   : > { %p1965_p6 = scmp.ne.s32.totalorder %s3014_s2, %s1964_s7  ;;  %p1971_p10 = scmp.lt.u32.totalorder %s1964_s7, %s3014_s2 }
  0x1a   : > { %p1966_p7 = pneg %p2312_p5 }
  0x1c   : > { %p1967_p8 = pnand %p1966_p7, %p1965_p6 }
  0x1e   : > { %p1968_p9 = pneg %p1967_p8 }
  0x20   : > { %p1973_p11 = pnand %p1971_p10, %p1968_p9 }
  0x22   : > { %1976 = shalt.err (!%p1973_p11)
}
  0x23   : > { %s1977_s12 = scalar_lea.vmem %s181_s29, 1536  ;;  %p1985_p2 = scmp.lt.s32.totalorder %s181_s29, %s181_s29 }
  0x24   : > { %p1978_p12 = scmp.ne.s32.totalorder %s181_s29, %s1977_s12  ;;  %p1986_p4 = scmp.lt.s32.totalorder %s1977_s12, %s1977_s12 }
  0x26   : > { %p1980_p13 = pnand %p1978_p12, %p1966_p7  ;;  %p1987_p1 = por %p1986_p4, %p1985_p2 }
  0x28   : > { %p1981_p0 = pneg %p1980_p13 }
  0x2a   : > { %p1988_p3 = pnand %p1987_p1, %p1981_p0 }
  0x2c   : > { %1991 = shalt.err (!%p1988_p3)
}
  0x2d   : > { %s2186_s13 = smov 256   ;;  %s2187_s14 = smov 16  }
  0x2e   : > { %1488 = dma.hbm_to_vmem [thread:$0]  (!%p2312_p5), %s3014_s2, 1536, %s181_s29, [#allocation6], %s2186_s13, %s2186_s13, %s2187_s14  }
  0x2f   : > { %s1338_s6 = sadd.s32 4294967294, %s2183_s25   ;;  %s32_s7 = sadd.s32 1, %s2175_s23 }
  0x30   : > { %s35_s8 = sadd.s32 1, %s2179_s24  ;;  %p33_p1 = scmp.ge.s32.totalorder %s32_s7, 2 }
  0x31   : > { %s44_s9 = sadd.s32 1, %s2163_s20  ;;  %p51_p3 = scmp.ne.s32.totalorder %s2163_s20, %s2159_s19 }
  0x32   : > { %p3004_p6 = scmp.eq.s32.totalorder %s2183_s25, 0  ;;  %s3053_s8 = smov (!%p33_p1, %s35_s8), %s2179_s24 }
  0x33   : > { %s2339_s10 = scalar_select %p33_p1, 0, %s32_s7  }
  0x34   : > { %p2349_p5 = por %p3004_p6, %p51_p3  ;;  %p37_p7 = scmp.ge.s32.totalorder %s3053_s8, 2 }
  0x35   : > { %3015 = sst [smem:[#allocation16_spill]] %s2339_s10  ;;  %s40_s30 = ssub.s32 %s2175_s23, %s2339_s10 }
  0x36   : > { %p57_p8 = scmp.ne.s32.totalorder %s2159_s19, %s2155_s18  ;;  %s68_s11 = sadd.s32 1, %s2339_s10 }
  0x37   : > { %p155_p9 = scmp.eq.s32.totalorder %s2299_s26, 3  ;;  %s3055_s8 = smov (%p37_p7, %s3053_s8), 0 }
  0x38   : > { %3017 = sst [smem:[#allocation17_spill]] %s3055_s8  ;;  %p3018_p10 = scmp.eq.s32.totalorder %s2299_s26, 0 }
  0x39   : > { %s70_s13 = ssub.s32 %s32_s7, %s68_s11  ;;  %s39_s14 = ssub.s32 %s2179_s24, %s3055_s8 }
  0x3a   : > { %p2364_p11 = por %p3018_p10, %p57_p8  ;;  %p2373_p12 = por %p155_p9, %p51_p3 }
  0x3b   : > { %s41_s5 = sor.u32 %s40_s30, %s39_s14  ;;  %s71_s2 = sor.u32 %s70_s13, %s39_s14 }
  0x3c   : > { %s3019_s12 = scalar_select %p2364_p11, 1, 0 }
  0x3d   : > { %s3020_s28 = scalar_select %p2373_p12, 1, 0 }
  0x3e   : > { %p42_p13 = scmp.eq.s32.totalorder %s41_s5, 0  ;;  %p2377_p0 = scmp.eq.s32.totalorder %s71_s2, 0 }
  0x3f   : > { %3021 = sst [smem:[#allocation18_spill]] %s3020_s28  ;;  %p161_p2 = scmp.eq.s32.totalorder %s1338_s6, 3 }
  0x40   : > { %p3003_p4 = scmp.lt.s32.totalorder %s2183_s25, 4  ;;  %s197_s11 = sand.u32 1, %s2163_s20  }
  0x41   : > { %s2383_s4 = scalar_select %p42_p13, %s2163_s20, %s44_s9  }
  0x42   : > { %p2388_p1 = por %p161_p2, %p57_p8  ;;  %s1342_s8 = sshll.u32 %s197_s11, 5 }
  0x43   : > { %3023 = sst [smem:[#allocation19_spill]] %s2383_s4  ;;  %s1343_s28 = sshll.u32 %s2175_s23, 2 }
  0x44   : > { %s3024_s7 = scalar_select %p2388_p1, 1, 0 }
  0x45   : > { %s1472_s21 = smul.u32 12, %s2179_s24  ;;  %s201_s30 = scalar_lea.vmem [#allocation2], %s1342_s8 }
  0x46   : > { %s211_s13 = sshll.u32 %s201_s30, 4  ;;  %p2401_p3 = pnand %p3003_p4, %p2349_p5  ;;  %s2395_s13 = int_to_ptr.vmem [resolvable:$true] %s211_s13 }
  0x47   : > { %s207_s6 = sadd.s32 %s1472_s21, %s1343_s28  ;;  %s198_s30 = scalar_lea.sflag [#allocation3], %s197_s11 }
  0x48   : > { %s1344_s9 = sshll.u32 %s207_s6, 7  ;;  %p1994_p7 = pneg %p2401_p3 }
  0x49   : > { %s2408_s4 = scalar_lea.hbm %s2989_s0, %s1344_s9  ;;  %s2413_s29 = scalar_lea.hbm %s2990_s1, %s1344_s9 }
  0x4a   : > { %s1992_s23 = scalar_lea.hbm %s2408_s4, 512  ;;  %s1997_s6 = scalar_lea.hbm %s2989_s0, 3072 }
  0x4b   : > { %p1993_p5 = scmp.ne.s32.totalorder %s2408_s4, %s1992_s23  ;;  %p1998_p10 = scmp.lt.u32.totalorder %s2408_s4, %s2989_s0 }
  0x4c   : > { %p1999_p13 = scmp.lt.u32.totalorder %s1997_s6, %s1992_s23  ;;  %p2001_p4 = scmp.lt.u32.totalorder %s1992_s23, %s2408_s4 }
  0x4d   : > { %p1995_p8 = pnand %p1994_p7, %p1993_p5 }
  0x4e   : > { %p2000_p2 = por %p1999_p13, %p1998_p10 }
  0x4f   : > { %p1996_p9 = pneg %p1995_p8 }
  0x50   : > { %p2002_p6 = por %p2001_p4, %p2000_p2 }
  0x52   : > { %p2003_p1 = pnand %p2002_p6, %p1996_p9 }
  0x54   : > { %2006 = shalt.err (!%p2003_p1)
}
  0x55   : > { %s2007_s11 = scalar_lea.vmem %s2395_s13, 512  ;;  %s2188_s9 = smov [#allocation2]  }
  0x56   : > { %p2008_p5 = scmp.ne.s32.totalorder %s2395_s13, %s2007_s11  ;;  %s2012_s5 = sshll.u32 %s2188_s9, 4  ;;  %s2013_s5 = int_to_ptr.vmem [resolvable:$false] %s2012_s5 }
  0x57   : > { %s2014_s8 = scalar_lea.vmem %s2013_s5, 1024  ;;  %p2015_p11 = scmp.lt.s32.totalorder %s2395_s13, %s2013_s5 }
  0x58   : > { %p2010_p8 = pnand %p2008_p5, %p1994_p7  ;;  %p2016_p10 = scmp.lt.s32.totalorder %s2014_s8, %s2007_s11 }
  0x5a   : > { %p2011_p12 = pneg %p2010_p8  ;;  %p2017_p13 = por %p2016_p10, %p2015_p11 }
  0x5c   : > { %p2018_p4 = pnand %p2017_p13, %p2011_p12 }
  0x5e   : > { %2021 = shalt.err (!%p2018_p4)
}
  0x5f   : > { %1492 = dma.hbm_to_vmem [thread:$0]  (!%p2401_p3), %s2408_s4, 512, %s2395_s13, %s198_s30  }
  0x60   : > { %s74_s23 = sadd.s32 1, %s2151_s17  ;;  %p81_p6 = scmp.ne.s32.totalorder %s2151_s17, %s2147_s16 }
  0x61   : > { %s2444_s2 = scalar_select %p2377_p0, %s2151_s17, %s74_s23  }
  0x62   : > { %p87_p11 = scmp.ne.s32.totalorder %s2147_s16, %s2143_s15  ;;  %s218_s21 = sand.u32 1, %s2183_s25  }
  0x63   : > { %s220_s28 = sand.u32 1, %s2151_s17   ;;  %p3026_p12 = scmp.eq.s32.totalorder %s2183_s25, 0 }
  0x64   : > { %p3027_p7 = scmp.eq.s32.totalorder %s2299_s26, 0  ;;  %s1345_s24 = sshll.u32 %s220_s28, 5 }
  0x65   : > { %p83_p1 = por %p81_p6, %p3026_p12  ;;  %s2461_s14 = scalar_lea.hbm %s2413_s29, 512 }
  0x66   : > { %p2456_p9 = por %p87_p11, %p3027_p7  ;;  %s222_s4 = scalar_lea.vmem [#allocation5], %s1345_s24 }
  0x67   : > { %s233_s10 = sshll.u32 %s222_s4, 4  ;;  %p3029_p0 = scmp.lt.s32.totalorder %s2183_s25, 4  ;;  %s2469_s10 = int_to_ptr.vmem [resolvable:$true] %s233_s10 }
  0x68   : > { %s219_s13 = scalar_lea.sflag [#allocation6], %s218_s21  ;;  %s2052_s30 = scalar_lea.hbm %s2413_s29, 1024 }
  0x69   : > { %p2465_p3 = pnand %p3029_p0, %p83_p1  ;;  %p2023_p2 = scmp.ne.s32.totalorder %s2461_s14, %s2052_s30 }
  0x6a   : > { %s2027_s5 = scalar_lea.hbm %s2990_s1, 3072  ;;  %p2028_p13 = scmp.lt.u32.totalorder %s2461_s14, %s2990_s1 }
  0x6b   : > { %p2024_p5 = pneg %p2465_p3  ;;  %p2029_p4 = scmp.lt.u32.totalorder %s2027_s5, %s2052_s30 }
  0x6c   : > { %p2031_p11 = scmp.lt.u32.totalorder %s2052_s30, %s2461_s14 }
  0x6d   : > { %p2025_p8 = pnand %p2024_p5, %p2023_p2  ;;  %p2030_p6 = por %p2029_p4, %p2028_p13 }
  0x6f   : > { %p2026_p10 = pneg %p2025_p8  ;;  %p2032_p12 = por %p2031_p11, %p2030_p6 }
  0x71   : > { %p2033_p1 = pnand %p2032_p12, %p2026_p10 }
  0x73   : > { %2036 = shalt.err (!%p2033_p1)
}
  0x74   : > { %s2037_s29 = scalar_lea.vmem %s2469_s10, 512  ;;  %s2189_s21 = smov [#allocation5]  }
  0x75   : > { %p2038_p7 = scmp.ne.s32.totalorder %s2469_s10, %s2037_s29  ;;  %s2042_s28 = sshll.u32 %s2189_s21, 4  ;;  %s2043_s28 = int_to_ptr.vmem [resolvable:$false] %s2042_s28 }
  0x76   : > { %s2044_s24 = scalar_lea.vmem %s2043_s28, 1024  ;;  %p2045_p8 = scmp.lt.s32.totalorder %s2469_s10, %s2043_s28 }
  0x77   : > { %p2040_p0 = pnand %p2038_p7, %p2024_p5  ;;  %p2046_p13 = scmp.lt.s32.totalorder %s2044_s24, %s2037_s29 }
  0x79   : > { %p2041_p2 = pneg %p2040_p0  ;;  %p2047_p4 = por %p2046_p13, %p2045_p8 }
  0x7b   : > { %p2048_p6 = pnand %p2047_p4, %p2041_p2 }
  0x7d   : > { %2051 = shalt.err (!%p2048_p6)
}
  0x7e   : > { %1495 = dma.hbm_to_vmem [thread:$0]  (!%p2465_p3), %s2461_s14, 512, %s2469_s10, %s219_s13  }
  0x7f   : > { %p3031_p10 = scmp.ne.s32.totalorder %s3012_s27, 0 }
  0x80   : > { %s2499_s4 = sand.u32 (!%p3031_p10), 1, %s2159_s19   ;;  %p3032_p5 = scmp.ne.s32.totalorder (!%p3031_p10), %s3019_s12, 0 }
  0x81   : > { %242 = sbr.rel (%p3031_p10) target bundleno = 712 (0x2c8), region = 36  ;;  %s1349_s30 = sshll.u32 (!%p3031_p10), %s2499_s4, 5 }
  0x82   : > { %s245_s11 = scalar_lea.sflag (!%p3031_p10), [#allocation3], %s2499_s4  ;;  %s248_s9 = scalar_lea.vmem (!%p3031_p10), [#allocation2], %s1349_s30 }
  0x88   : > { %2126 = dma.done.wait (%p3032_p5), %s245_s11, 512  }
  0x89   : > { %2128 = vsyncadd (%p3032_p5), %s245_s11, 4294966784  ;;  %s253_s14 = sand.u32 1, %s2299_s26   ;;  %s255_s27 = sand.u32 1, %s2147_s16  }
  0x8a   : > { %s1350_s10 = sshll.u32 %s255_s27, 5  ;;  %s254_s15 = scalar_lea.sflag [#allocation6], %s253_s14 }
  0x8b   : > { %s257_s13 = scalar_lea.vmem [#allocation5], %s1350_s10 }
  0x8c   : > { %2130 = dma.done.wait (%p2456_p9), %s254_s15, 512  }
  0x8d   : > { %2132 = vsyncadd (%p2456_p9), %s254_s15, 4294966784  ;;  %p3033_p3 = scmp.eq.s32.totalorder %s2299_s26, 0 }
  0x8f   : > { %2134 = dma.done.wait (%p3033_p3), [#allocation6], 1536   ;;  %p3034_p11 = pmov %p3033_p3 }
  0x90   : > { %v2517_v0 = vld [vmem:[%s248_s9] sm:$0xff]  ;;  %v2519_v1 = vld [vmem:[%s248_s9 + $0x8] sm:$0xff]  ;;  %v2521_v2 = vld [vmem:[%s248_s9 + $0x10] sm:$0xff]  ;;  %s2190_s12 = smov 127   ;;  %s2191_s26 = smov 49   ;;  %vm316_vm0 = vcmask 1039360  }
  0x91   : > { %2136 = vsyncadd (%p3034_p11), [#allocation6], 4294965760  ;;  %306 = vrot.lane.b32.xlu1 %v2517_v0, %s2190_s12  ;;  %v2526_v3 = vpack.i.bf16 %v2521_v2, %v2519_v1  ;;  %v2528_v4 = vld [vmem:[%s248_s9 + $0x18] sm:$0xff]  ;;  %v299_v5 = vld [vmem:[%s257_s13] sm:$0xff]  ;;  %s2192_s6 = smov 48   ;;  %s2193_s5 = smov 47  }
  0x92   : > { %v2532_v6 = vpack.i.bf16 %v299_v5, %v2528_v4  ;;  %v300_v7 = vld [vmem:[%s257_s13 + $0x8] sm:$0xff]  ;;  %s2194_s8 = smov 39   ;;  %s2195_s23 = smov 38   ;;  %vm602_vm1 = vcmask 400384   ;;  %vm617_vm2 = vcmask 392192   ;;  %vm632_vm3 = vcmask 384000  }
  0x93   : > { %1623 = vrot.lane.b32.xlu0 %v2526_v3, %s2190_s12  ;;  %s2196_s29 = smov 37   ;;  %s2197_s21 = smov 28   ;;  %v1712_v8 = vpack.i.bf16 %v2517_v0, %v300_v7  ;;  %vm647_vm4 = vcmask 318464   ;;  %vm662_vm5 = vcmask 310272   ;;  %vm677_vm6 = vcmask 302080  }
  0x94   : > { %s2198_s28 = smov 29   ;;  %s2199_s24 = smov 27   ;;  %vm692_vm7 = vcmask 236544   ;;  %vm468_vm8 = vcmask 228352   ;;  %vm335_vm9 = vcmask 1031168   ;;  %vm487_vm10 = vcmask 220160  }
  0x95   : > { %1633 = vrot.lane.b32.xlu1 %v2526_v3, %s2191_s26  ;;  %s2200_s30 = smov 126   ;;  %s2201_s11 = smov 118   ;;  %vm354_vm11 = vcmask 965632   ;;  %vm950_vm12 = vcmask 719872   ;;  %vm392_vm13 = vcmask 949248   ;;  %vm373_vm14 = vcmask 957440  }
  0x96   : > { %s2202_s9 = smov 117   ;;  %s2203_s14 = smov 116   ;;  %vm430_vm15 = vcmask 875520  }
  0x97   : > { %1628 = vrot.lane.b32.xlu0 %v2532_v6, %s2190_s12  ;;  %s2204_s27 = smov 108   ;;  %s2205_s10 = smov 107  }
  0x98   : > { %s2206_s15 = smov 106   ;;  %s2207_s13 = smov 26  }
  0x99   : > { %600 = vrot.lane.b32.xlu1 %v300_v7, %s2191_s26  ;;  %s2208_s12 = smov 18  }
  0x9b   : > { %1638 = vrot.lane.b32.xlu0 %v2532_v6, %s2191_s26  ;;  %s2209_s26 = smov 17  }
  0x9d   : > { %1648 = vrot.lane.b32.xlu1 %v2532_v6, %s2192_s6 }
  0x9f   : > { %1643 = vrot.lane.b32.xlu0 %v2526_v3, %s2192_s6 }
  0xa1   : > { %1653 = vrot.lane.b32.xlu1 %v2526_v3, %s2193_s5 }
  0xa3   : > { %615 = vrot.lane.b32.xlu0 %v300_v7, %s2192_s6  ;;  %s2210_s6 = smov 16  }
  0xa5   : > { %630 = vrot.lane.b32.xlu1 %v300_v7, %s2193_s5 }
  0xa7   : > { %1658 = vrot.lane.b32.xlu0 %v2532_v6, %s2193_s5  ;;  %s2211_s5 = smov 8  }
  0xa9   : > { %1668 = vrot.lane.b32.xlu1 %v2532_v6, %s2194_s8 }
  0xab   : > { %1663 = vrot.lane.b32.xlu0 %v2526_v3, %s2194_s8 }
  0xad   : > { %1673 = vrot.lane.b32.xlu1 %v2526_v3, %s2195_s23 }
  0xaf   : > { %645 = vrot.lane.b32.xlu0 %v300_v7, %s2194_s8  ;;  %s2212_s8 = smov 7  }
  0xb1   : > { %660 = vrot.lane.b32.xlu1 %v300_v7, %s2195_s23 }
  0xb3   : > { %1678 = vrot.lane.b32.xlu0 %v2532_v6, %s2195_s23 }
  0xb5   : > { %1688 = vrot.lane.b32.xlu1 %v2532_v6, %s2196_s29 }
  0xb7   : > { %1683 = vrot.lane.b32.xlu0 %v2526_v3, %s2196_s29 }
  0xb9   : > { %1693 = vrot.lane.b32.xlu1 %v2526_v3, %s2197_s21 }
  0xbb   : > { %675 = vrot.lane.b32.xlu0 %v300_v7, %s2196_s29  ;;  %s3036_s29 = sld [smem:[#allocation18_spill]] }
  0xbd   : > { %1703 = vrot.lane.b32.xlu1 %v2526_v3, %s2198_s28 }
  0xbf   : > { %1698 = vrot.lane.b32.xlu0 %v2532_v6, %s2197_s21 }
  0xc1   : > { %690 = vrot.lane.b32.xlu1 %v300_v7, %s2198_s28  ;;  %p3039_p12 = scmp.ne.s32.totalorder %s3036_s29, 0 }
  0xc3   : > { %1708 = vrot.lane.b32.xlu0 %v2532_v6, %s2198_s28 }
  0xc5   : > { %479 = vrot.lane.b32.xlu1 %v2519_v1, %s2199_s24 }
  0xc7   : > { %1713 = vrot.lane.b32.xlu0 %v1712_v8, %s2197_s21 }
  0xc9   : > { %483 = vrot.lane.b32.xlu1 %v2528_v4, %s2199_s24 }
  0xcb   : > { %481 = vrot.lane.b32.xlu0 %v2521_v2, %s2199_s24 }
  0xcd   : > { %700 = vrot.lane.b32.xlu1 %v300_v7, %s2199_s24 }
  0xcf   : > { %485 = vrot.lane.b32.xlu0 %v299_v5, %s2199_s24 }
  0xd1   : > { %1723 = vrot.lane.b32.xlu1 %v2532_v6, %s2200_s30 }
  0xd3   : > { %1718 = vrot.lane.b32.xlu0 %v2526_v3, %s2200_s30 }
  0xd5   : > { %1733 = vrot.lane.b32.xlu1 %v2532_v6, %s2201_s11 }
  0xd7   : > { %1728 = vrot.lane.b32.xlu0 %v2526_v3, %s2201_s11 }
  0xd9   : > { %344 = vrot.lane.b32.xlu1 %v2517_v0, %s2201_s11 }
  0xdb   : > { %325 = vrot.lane.b32.xlu0 %v2517_v0, %s2200_s30 }
  0xdd   : > { %1743 = vrot.lane.b32.xlu1 %v2532_v6, %s2202_s9 }
  0xdf   : > { %1738 = vrot.lane.b32.xlu0 %v2526_v3, %s2202_s9 }
  0xe1   : > { %1753 = vrot.lane.b32.xlu1 %v2532_v6, %s2203_s14 }
  0xe3   : > { %1748 = vrot.lane.b32.xlu0 %v2526_v3, %s2203_s14 }
  0xe5   : > { %382 = vrot.lane.b32.xlu1 %v2517_v0, %s2203_s14 }
  0xe7   : > { %363 = vrot.lane.b32.xlu0 %v2517_v0, %s2202_s9  ;;  %s1196_s9 = scalar_lea.sflag [#allocation4], %s2499_s4 }
  0xe9   : > { %1763 = vrot.lane.b32.xlu1 %v2532_v6, %s2204_s27 }
  0xeb   : > { %1758 = vrot.lane.b32.xlu0 %v2526_v3, %s2204_s27 }
  0xed   : > { %1773 = vrot.lane.b32.xlu1 %v2532_v6, %s2205_s10 }
  0xef   : > { %1768 = vrot.lane.b32.xlu0 %v2526_v3, %s2205_s10 }
  0xf1   : > { %420 = vrot.lane.b32.xlu1 %v2517_v0, %s2205_s10 }
  0xf3   : > { %401 = vrot.lane.b32.xlu0 %v2517_v0, %s2204_s27  ;;  %s2214_s27 = smov [#allocation8]  }
  0xf4   : > { %s2057_s10 = sshll.u32 %s2214_s27, 4  ;;  %s2058_s10 = int_to_ptr.vmem [resolvable:$false] %s2057_s10 }
  0xf5   : > { %1783 = vrot.lane.b32.xlu1 %v2532_v6, %s2206_s15 }
  0xf7   : > { %1778 = vrot.lane.b32.xlu0 %v2526_v3, %s2206_s15 }
  0xf9   : > { %1788 = vrot.lane.b32.xlu1 %v2526_v3, %s2207_s13 }
  0xfb   : > { %439 = vrot.lane.b32.xlu0 %v2517_v0, %s2206_s15  ;;  %s2059_s15 = scalar_lea.vmem %s2058_s10, 6144 }
  0xfd   : > { %477 = vrot.lane.b32.xlu1 %v2517_v0, %s2199_s24  ;;  %s3037_s24 = sld [smem:[#allocation21_spill]] }
  0xff   : > { %1793 = vrot.lane.b32.xlu0 %v2532_v6, %s2207_s13 }
 0x101   : > { %1798 = vrot.lane.b32.xlu1 %v2526_v3, %s2208_s12 }
 0x103   : > { %496 = vrot.lane.b32.xlu0 %v2517_v0, %s2207_s13  ;;  %v307_v9 = vpop.permute.xlu1 %306  ;;  %s1473_s13 = smul.u32 192, %s2499_s4  ;;  %s3038_s30 = smov %s3037_s24 }
 0x105   : > { %v1624_v10 = vpop.permute.xlu0 %1623  ;;  %1808 = vrot.lane.b32.xlu1 %v2526_v3, %s2209_s26 }
 0x106   : > { %v1626_v11 = vunpack.i.h.bf16 %v1624_v10  ;;  %v1625_v12 = vunpack.i.l.bf16 %v1624_v10 }
 0x107   : > { %1803 = vrot.lane.b32.xlu0 %v2532_v6, %s2208_s12  ;;  %v2589_v13 = vpop.permute.xlu1 %1633 }
 0x108   : > { %v318_v14 = vsel %vm316_vm0, %v1625_v12, %v1626_v11  ;;  %v317_v15 = vsel %vm316_vm0, %v307_v9, %v1625_v12  ;;  %v1636_v37 = vunpack.i.h.bf16 %v2589_v13  ;;  %v1635_v38 = vunpack.i.l.bf16 %v2589_v13 }
 0x109   : > { %v1629_v16 = vpop.permute.xlu0 %1628  ;;  %515 = vrot.lane.b32.xlu1 %v2517_v0, %s2208_s12  ;;  %v1368_v17 = vpack.c.bf16 %v318_v14, %v2519_v1  ;;  %v1370_v18 = vpack.c.bf16 %v317_v15, %v2517_v0  ;;  %v1857_v40 = vpack.i.bf16 %v317_v15, %v2517_v0  ;;  %s2892_s12 = scalar_lea.vmem [#allocation8], %s1473_s13 }
 0x10a   : > { %v1631_v19 = vunpack.i.h.bf16 %v1629_v16  ;;  %v1630_v20 = vunpack.i.l.bf16 %v1629_v16  ;;  %v603_v47 = vsel %vm602_vm1, %v1635_v38, %v1636_v37  ;;  %s1211_s23 = sshll.u32 %s2892_s12, 4  ;;  %s2924_s23 = int_to_ptr.vmem [resolvable:$true] %s1211_s23 }
 0x10b   : > { %1369 = vmatprep.subr.bf16.mxu0 %v1368_v17  ;;  %1813 = vrot.lane.b32.xlu0 %v2532_v6, %s2209_s26  ;;  %v601_v21 = vpop.permute.xlu1 %600  ;;  %s2053_s14 = scalar_lea.vmem %s2924_s23, 3072  ;;  %p2060_p0 = scmp.lt.s32.totalorder %s2924_s23, %s2058_s10 }
 0x10c   : > { %v319_v22 = vsel %vm316_vm0, %v1626_v11, %v1630_v20  ;;  %1371 = vmatpush1.bf16.msra.mxu0 %v1370_v18  ;;  %v320_v23 = vsel %vm316_vm0, %v1630_v20, %v1631_v19  ;;  %vm411_vm0 = vcmask 883712   ;;  %p2054_p9 = scmp.ne.s32.totalorder %s2924_s23, %s2053_s14  ;;  %p2061_p2 = scmp.lt.s32.totalorder %s2059_s15, %s2053_s14 }
 0x10d   : > { %v1639_v24 = vpop.permute.xlu0 %1638  ;;  %1818 = vrot.lane.b32.xlu1 %v2526_v3, %s2210_s6  ;;  %v1420_v25 = vpack.c.bf16 %v320_v23, %v2528_v4  ;;  %v1422_v26 = vpack.c.bf16 %v319_v22, %v2521_v2  ;;  %v1847_v33 = vpack.i.bf16 %v319_v22, %v318_v14  ;;  %v1852_v45 = vpack.i.bf16 %v1631_v19, %v320_v23 }
 0x10e   : > { %v1641_v35 = vunpack.i.h.bf16 %v1639_v24  ;;  %v1640_v36 = vunpack.i.l.bf16 %v1639_v24  ;;  %p2055_p1 = pnand %p2054_p9, %p3039_p12  ;;  %p2062_p8 = por %p2061_p2, %p2060_p0 }
 0x10f   : > { %1421 = vmatprep.subr.bf16.mxu1 %v1420_v25  ;;  %534 = vrot.lane.b32.xlu0 %v2517_v0, %s2209_s26  ;;  %v1649_v27 = vpop.permute.xlu1 %1648  ;;  %s3035_s26 = sld [smem:[#allocation13_spill]] }
 0x110   : > { %1423 = vmatpush1.bf16.msra.mxu1 %v1422_v26  ;;  %v1651_v42 = vunpack.i.h.bf16 %v1649_v27  ;;  %v605_v43 = vsel %vm602_vm1, %v1640_v36, %v1641_v35  ;;  %v606_v44 = vsel %vm602_vm1, %v1641_v35, %v601_v21  ;;  %v1650_v48 = vunpack.i.l.bf16 %v1649_v27  ;;  %p2056_p7 = pneg %p2055_p1 }
 0x111   : > { %v2603_v28 = vpop.permute.xlu0 %1643  ;;  %1828 = vrot.lane.b32.xlu1 %v2526_v3, %s2211_s5  ;;  %v604_v51 = vsel %vm602_vm1, %v1636_v37, %v1640_v36  ;;  %v1867_v55 = vpack.i.bf16 %v606_v44, %v605_v43  ;;  %vm449_vm1 = vcmask 867328  }
 0x112   : > { %v1646_v49 = vunpack.i.h.bf16 %v2603_v28  ;;  %v1645_v50 = vunpack.i.l.bf16 %v2603_v28  ;;  %v620_v56 = vsel %vm617_vm2, %v1650_v48, %v1651_v42  ;;  %v1862_v60 = vpack.i.bf16 %v604_v51, %v603_v47  ;;  %p2063_p13 = pnand %p2062_p8, %p2056_p7 }
 0x113   : > { %1823 = vrot.lane.b32.xlu0 %v2532_v6, %s2210_s6  ;;  %v2607_v29 = vpop.permute.xlu1 %1653 }
 0x114   : > { %v1656_v52 = vunpack.i.h.bf16 %v2607_v29  ;;  %v1655_v53 = vunpack.i.l.bf16 %v2607_v29  ;;  %v618_v61 = vsel %vm617_vm2, %v1645_v50, %v1646_v49  ;;  %v619_v62 = vsel %vm617_vm2, %v1646_v49, %v1650_v48 }
 0x115   : > { %v616_v30 = vpop.permute.xlu0 %615  ;;  %553 = vrot.lane.b32.xlu1 %v2517_v0, %s2210_s6  ;;  %v1872_v7 = vpack.i.bf16 %v619_v62, %v618_v61  ;;  %v1882_v13 = vpack.i.bf16 %v1645_v50, %v1635_v38  ;;  %s1474_s6 = smul.u32 48, %s2171_s22 }
 0x116   : > { %v621_v57 = vsel %vm617_vm2, %v1651_v42, %v616_v30  ;;  %v633_v1 = vsel %vm632_vm3, %v1655_v53, %v1656_v52  ;;  %vm506_vm2 = vcmask 211968  }
 0x117   : > { %1833 = vrot.lane.b32.xlu0 %v2532_v6, %s2211_s5  ;;  %v2611_v31 = vpop.permute.xlu1 %630  ;;  %v1877_v63 = vpack.i.bf16 %v621_v57, %v620_v56 }
 0x119   : > { %v2613_v32 = vpop.permute.xlu0 %1658  ;;  %1838 = vrot.lane.b32.xlu1 %v2526_v3, %s2212_s8 }
 0x11a   : > { %v1660_v58 = vunpack.i.l.bf16 %v2613_v32  ;;  %v1661_v8 = vunpack.i.h.bf16 %v2613_v32 }
 0x11b   : > { %572 = vrot.lane.b32.xlu0 %v2517_v0, %s2211_s5  ;;  %v2618_v34 = vpop.permute.xlu1 %1668  ;;  %s1364_s5 = sshll.u32 %s3035_s26, 2 }
 0x11c   : > { %v1670_v2 = vunpack.i.l.bf16 %v2618_v34  ;;  %v634_v5 = vsel %vm632_vm3, %v1656_v52, %v1660_v58  ;;  %v1671_v15 = vunpack.i.h.bf16 %v2618_v34  ;;  %v635_v16 = vsel %vm632_vm3, %v1660_v58, %v1661_v8  ;;  %s1208_s22 = sadd.s32 %s1474_s6, %s1364_s5 }
 0x11d   : > { %v2622_v39 = vpop.permute.xlu0 %1663  ;;  %1848 = vrot.lane.b32.xlu1 %v1847_v33, %s2212_s8  ;;  %v1887_v10 = vpack.i.bf16 %v634_v5, %v633_v1  ;;  %v636_v17 = vsel %vm632_vm3, %v1661_v8, %v2611_v31  ;;  %vm525_vm3 = vcmask 146432  }
 0x11e   : > { %v1666_v3 = vunpack.i.h.bf16 %v2622_v39  ;;  %v1665_v4 = vunpack.i.l.bf16 %v2622_v39  ;;  %v1892_v25 = vpack.i.bf16 %v636_v17, %v635_v16  ;;  %v650_v26 = vsel %vm647_vm4, %v1670_v2, %v1671_v15 }
 0x11f   : > { %1843 = vrot.lane.b32.xlu0 %v2532_v6, %s2212_s8  ;;  %v2628_v41 = vpop.permute.xlu1 %1673 }
 0x120   : > { %v648_v11 = vsel %vm647_vm4, %v1665_v4, %v1666_v3  ;;  %v649_v12 = vsel %vm647_vm4, %v1666_v3, %v1670_v2  ;;  %v1676_v22 = vunpack.i.h.bf16 %v2628_v41  ;;  %v1675_v23 = vunpack.i.l.bf16 %v2628_v41 }
 0x121   : > { %v646_v46 = vpop.permute.xlu0 %645  ;;  %1858 = vrot.lane.b32.xlu1 %v1857_v40, %s2212_s8  ;;  %v1897_v19 = vpack.i.bf16 %v649_v12, %v648_v11  ;;  %v1907_v28 = vpack.i.bf16 %v1665_v4, %v1655_v53 }
 0x122   : > { %v651_v27 = vsel %vm647_vm4, %v1671_v15, %v646_v46  ;;  %v663_v35 = vsel %vm662_vm5, %v1675_v23, %v1676_v22  ;;  %vm544_vm4 = vcmask 138240  }
 0x123   : > { %1853 = vrot.lane.b32.xlu0 %v1852_v45, %s2212_s8  ;;  %v661_v54 = vpop.permute.xlu1 %660  ;;  %v1902_v33 = vpack.i.bf16 %v651_v27, %v650_v26 }
 0x125   : > { %v1679_v59 = vpop.permute.xlu0 %1678  ;;  %1868 = vrot.lane.b32.xlu1 %v1867_v55, %s2212_s8 }
 0x126   : > { %v1681_v20 = vunpack.i.h.bf16 %v1679_v59  ;;  %v1680_v21 = vunpack.i.l.bf16 %v1679_v59 }
 0x127   : > { %v2638_v0 = vpop.permute.xlu1 %1688  ;;  %1863 = vrot.lane.b32.xlu0 %v1862_v60, %s2212_s8 }
 0x128   : > { %v1691_v30 = vunpack.i.h.bf16 %v2638_v0  ;;  %v665_v31 = vsel %vm662_vm5, %v1680_v21, %v1681_v20  ;;  %v666_v32 = vsel %vm662_vm5, %v1681_v20, %v661_v54  ;;  %v1690_v36 = vunpack.i.l.bf16 %v2638_v0 }
 0x129   : > { %v2646_v6 = vpop.permute.xlu0 %1683  ;;  %1878 = vrot.lane.b32.xlu1 %v1877_v63, %s2212_s8  ;;  %v664_v39 = vsel %vm662_vm5, %v1676_v22, %v1680_v21  ;;  %v1917_v41 = vpack.i.bf16 %v666_v32, %v665_v31  ;;  %v903_v22 = vld [vmem:[#allocation7 + $0x8] sm:$0xff]  ;;  %vm563_vm5 = vcmask 130048  }
 0x12a   : > { %v1686_v37 = vunpack.i.h.bf16 %v2646_v6  ;;  %v1685_v38 = vunpack.i.l.bf16 %v2646_v6  ;;  %v680_v42 = vsel %vm677_vm6, %v1690_v36, %v1691_v30  ;;  %v1912_v47 = vpack.i.bf16 %v664_v39, %v663_v35  ;;  %1358 = vmatprep.mubr.msk.f32.mxu1 %vm950_vm12, %v903_v22  ;;  %1352 = vmatprep.mubr.msk.f32.mxu0 %vm950_vm12, %v903_v22 }
 0x12b   : > { %v2650_v9 = vpop.permute.xlu1 %1693  ;;  %1873 = vrot.lane.b32.xlu0 %v1872_v7, %s2212_s8 }
 0x12c   : > { %v678_v49 = vsel %vm677_vm6, %v1685_v38, %v1686_v37  ;;  %v679_v50 = vsel %vm677_vm6, %v1686_v37, %v1690_v36  ;;  %v1696_v51 = vunpack.i.h.bf16 %v2650_v9  ;;  %v2693_v54 = vunpack.i.l.bf16 %v2650_v9 }
 0x12d   : > { %v676_v14 = vpop.permute.xlu0 %675  ;;  %1888 = vrot.lane.b32.xlu1 %v1887_v10, %s2212_s8  ;;  %v1922_v59 = vpack.i.bf16 %v679_v50, %v678_v49  ;;  %v1932_v1 = vpack.i.bf16 %v1685_v38, %v1675_v23 }
 0x12e   : > { %v681_v43 = vsel %vm677_vm6, %v1691_v30, %v676_v14  ;;  %v2706_v63 = vsel %vm468_vm8, %v2693_v54, %v1696_v51  ;;  %vm582_vm6 = vcmask 64512  }
 0x12f   : > { %v2660_v18 = vpop.permute.xlu1 %1703  ;;  %1883 = vrot.lane.b32.xlu0 %v1882_v13, %s2212_s8  ;;  %v1927_v52 = vpack.i.bf16 %v681_v43, %v680_v42 }
 0x130   : > { %v1706_v44 = vunpack.i.h.bf16 %v2660_v18  ;;  %v1705_v48 = vunpack.i.l.bf16 %v2660_v18 }
 0x131   : > { %v2665_v24 = vpop.permute.xlu0 %1698  ;;  %1898 = vrot.lane.b32.xlu1 %v1897_v19, %s2212_s8 }
 0x132   : > { %v1700_v55 = vunpack.i.l.bf16 %v2665_v24  ;;  %v693_v56 = vsel %vm692_vm7, %v1705_v48, %v1706_v44  ;;  %v1701_v6 = vunpack.i.h.bf16 %v2665_v24  ;;  %v1957_v14 = vpack.i.bf16 %v2693_v54, %v1705_v48 }
 0x133   : > { %v691_v29 = vpop.permute.xlu1 %690  ;;  %1893 = vrot.lane.b32.xlu0 %v1892_v25, %s2212_s8 }
 0x134   : > { %v2709_v0 = vsel %vm468_vm8, %v1696_v51, %v1700_v55  ;;  %v2726_v17 = vsel %vm468_vm8, %v1700_v55, %v1701_v6 }
 0x135   : > { %v1709_v34 = vpop.permute.xlu0 %1708  ;;  %1908 = vrot.lane.b32.xlu1 %v1907_v28, %s2212_s8  ;;  %v1947_v8 = vpack.i.bf16 %v2709_v0, %v2706_v63 }
 0x136   : > { %v1710_v45 = vunpack.i.l.bf16 %v1709_v34  ;;  %v1711_v60 = vunpack.i.h.bf16 %v1709_v34 }
 0x137   : > { %v2680_v40 = vpop.permute.xlu1 %479  ;;  %1903 = vrot.lane.b32.xlu0 %v1902_v33, %s2212_s8 }
 0x138   : > { %v694_v57 = vsel %vm692_vm7, %v1706_v44, %v1710_v45  ;;  %v695_v4 = vsel %vm692_vm7, %v1710_v45, %v1711_v60  ;;  %v696_v5 = vsel %vm692_vm7, %v1711_v60, %v691_v29  ;;  %vm813_vm7 = vcmask 56320  }
 0x139   : > { %v2684_v46 = vpop.permute.xlu0 %1713  ;;  %1918 = vrot.lane.b32.xlu1 %v1917_v41, %s2212_s8  ;;  %v1937_v62 = vpack.i.bf16 %v694_v57, %v693_v56  ;;  %v1942_v11 = vpack.i.bf16 %v696_v5, %v695_v4 }
 0x13a   : > { %v1715_v3 = vunpack.i.l.bf16 %v2684_v46 }
 0x13b   : > { %v2689_v53 = vpop.permute.xlu1 %483  ;;  %1913 = vrot.lane.b32.xlu0 %v1912_v47, %s2212_s8 }
 0x13c   : > { %v699_v13 = vsel %vm468_vm8, %v1701_v6, %v1715_v3 }
 0x13d   : > { %v2698_v58 = vpop.permute.xlu0 %481  ;;  %1928 = vrot.lane.b32.xlu1 %v1927_v52, %s2212_s8  ;;  %v1952_v24 = vpack.i.bf16 %v699_v13, %v2726_v17 }
 0x13e   : > { %v2738_v29 = vsel %vm487_vm10, %v2698_v58, %v2689_v53  ;;  %v2751_v43 = vsel %vm487_vm10, %v2680_v40, %v2698_v58 }
 0x13f   : > { %v2701_v61 = vpop.permute.xlu1 %700  ;;  %1923 = vrot.lane.b32.xlu0 %v1922_v59, %s2212_s8 }
 0x141   : > { %v2711_v2 = vpop.permute.xlu0 %485  ;;  %1938 = vrot.lane.b32.xlu1 %v1937_v62, %s2212_s8 }
 0x142   : > { %v702_v45 = vsel %vm487_vm10, %v2711_v2, %v2701_v61  ;;  %v2762_v51 = vsel %vm487_vm10, %v2689_v53, %v2711_v2 }
 0x143   : > { %v1724_v7 = vpop.permute.xlu1 %1723  ;;  %1933 = vrot.lane.b32.xlu0 %v1932_v1, %s2212_s8 }
 0x144   : > { %v1726_v9 = vunpack.i.h.bf16 %v1724_v7  ;;  %v1725_v12 = vunpack.i.l.bf16 %v1724_v7 }
 0x145   : > { %v1719_v10 = vpop.permute.xlu0 %1718  ;;  %1948 = vrot.lane.b32.xlu1 %v1947_v8, %s2212_s8 }
 0x146   : > { %v1721_v15 = vunpack.i.h.bf16 %v1719_v10  ;;  %v1720_v18 = vunpack.i.l.bf16 %v1719_v10  ;;  %v339_v21 = vsel %vm335_vm9, %v1725_v12, %v1726_v9 }
 0x147   : > { %v1734_v16 = vpop.permute.xlu1 %1733  ;;  %1943 = vrot.lane.b32.xlu0 %v1942_v11, %s2212_s8 }
 0x148   : > { %v1736_v19 = vunpack.i.h.bf16 %v1734_v16  ;;  %v1735_v20 = vunpack.i.l.bf16 %v1734_v16  ;;  %v337_v31 = vsel %vm335_vm9, %v1720_v18, %v1721_v15  ;;  %v338_v33 = vsel %vm335_vm9, %v1721_v15, %v1725_v12 }
 0x149   : > { %v1729_v23 = vpop.permute.xlu0 %1728  ;;  %1958 = vrot.lane.b32.xlu1 %v1957_v14, %s2212_s8 }
 0x14a   : > { %v1731_v25 = vunpack.i.h.bf16 %v1729_v23  ;;  %v1730_v26 = vunpack.i.l.bf16 %v1729_v23  ;;  %v358_v27 = vsel %vm354_vm11, %v1735_v20, %v1736_v19  ;;  %v914_v23 = vld [vmem:[%s2992_s3] sm:$0xff] }
 0x14b   : > { %v345_v28 = vpop.permute.xlu1 %344  ;;  %1953 = vrot.lane.b32.xlu0 %v1952_v24, %s2212_s8  ;;  %v1424_v30 = vpack.c.bf16 %v358_v27, %v339_v21  ;;  %v915_v24 = vld [vmem:[%s2992_s3 + $0x8] sm:$0xff] }
 0x14c   : > { %v356_v32 = vsel %vm354_vm11, %v1730_v26, %v1731_v25  ;;  %v357_v34 = vsel %vm354_vm11, %v1731_v25, %v1735_v20  ;;  %v355_v38 = vsel %vm354_vm11, %v345_v28, %v1730_v26  ;;  %v2213_v28 = vmov 0  }
 0x14d   : > { %v326_v35 = vpop.permute.xlu0 %325  ;;  %807 = vrot.lane.b32.xlu1 %v2738_v29, %s2212_s8  ;;  %1425 = vmatprep.subr.bf16.mxu1 %v1424_v30  ;;  %v1372_v36 = vpack.c.bf16 %v356_v32, %v337_v31  ;;  %v1426_v37 = vpack.c.bf16 %v357_v34, %v338_v33 }
 0x14e   : > { %v336_v39 = vsel %vm335_vm9, %v326_v35, %v1720_v18  ;;  %1962 = vset.pattern.permute.xlu1 %v2213_v28  ;;  %1963 = vset.pattern.permute.xlu0 %v2213_v28 }
 0x14f   : > { %v1374_v41 = vpack.c.bf16 %v355_v38, %v336_v39  ;;  %1373 = vmatprep.subr.bf16.mxu0 %v1372_v36  ;;  %v1744_v42 = vpop.permute.xlu1 %1743  ;;  %1427 = vmatpush1.bf16.msra.mxu1 %v1426_v37  ;;  %v916_v39 = vld [vmem:[%s2992_s3 + $0x10] sm:$0xff] }
 0x150   : > { %v1746_v44 = vunpack.i.h.bf16 %v1744_v42  ;;  %805 = vrot.lane.b32.xlu0 %v2751_v43, %s2212_s8  ;;  %v1745_v48 = vunpack.i.l.bf16 %v1744_v42 }
 0x151   : > { %v1739_v47 = vpop.permute.xlu0 %1738  ;;  %1375 = vmatpush1.bf16.msra.mxu0 %v1374_v41  ;;  %811 = vrot.lane.b32.xlu1 %v702_v45, %s2212_s8  ;;  %v918_v41 = vld [vmem:[%s2992_s3 + $0x20] sm:$0xff] }
 0x152   : > { %v1741_v49 = vunpack.i.h.bf16 %v1739_v47  ;;  %v1740_v52 = vunpack.i.l.bf16 %v1739_v47  ;;  %v377_v57 = vsel %vm373_vm14, %v1745_v48, %v1746_v44 }
 0x153   : > { %v1754_v50 = vpop.permute.xlu1 %1753 }
 0x154   : > { %v1756_v55 = vunpack.i.h.bf16 %v1754_v50  ;;  %v1755_v56 = vunpack.i.l.bf16 %v1754_v50  ;;  %809 = vrot.lane.b32.xlu0 %v2762_v51, %s2212_s8  ;;  %v375_v53 = vsel %vm373_vm14, %v1740_v52, %v1741_v49  ;;  %v376_v3 = vsel %vm373_vm14, %v1741_v49, %v1745_v48 }
 0x155   : > { %v1749_v58 = vpop.permute.xlu0 %1748  ;;  %922 = vperm.xlu1 %1962, %v914_v23  }
 0x156   : > { %v1751_v59 = vunpack.i.h.bf16 %v1749_v58  ;;  %v1750_v60 = vunpack.i.l.bf16 %v1749_v58  ;;  %v396_v61 = vsel %vm392_vm13, %v1755_v56, %v1756_v55  ;;  %v1716_v55 = vunpack.i.h.bf16 %v2684_v46 }
 0x157   : > { %v383_v62 = vpop.permute.xlu1 %382  ;;  %v1428_v1 = vpack.c.bf16 %v396_v61, %v377_v57 }
 0x158   : > { %803 = vrot.lane.b32.xlu0 %v2680_v40, %s2212_s8  ;;  %v394_v2 = vsel %vm392_vm13, %v1750_v60, %v1751_v59  ;;  %v395_v4 = vsel %vm392_vm13, %v1751_v59, %v1755_v56  ;;  %v393_v8 = vsel %vm392_vm13, %v383_v62, %v1750_v60  ;;  %s1365_s8 = sshll.u32 %s1208_s22, 7 }
 0x159   : > { %v364_v5 = vpop.permute.xlu0 %363  ;;  %1429 = vmatprep.subr.bf16.mxu1 %v1428_v1  ;;  %v1376_v6 = vpack.c.bf16 %v394_v2, %v375_v53  ;;  %v1430_v7 = vpack.c.bf16 %v395_v4, %v376_v3  ;;  %932 = vperm.xlu1 %1962, %v916_v39   ;;  %v919_v4 = vld [vmem:[%s2992_s3 + $0x28] sm:$0xff]  ;;  %s2921_s11 = scalar_lea.hbm %s3037_s24, %s1365_s8 }
 0x15a   : > { %v374_v9 = vsel %vm373_vm14, %v364_v5, %v1740_v52  ;;  %v917_v52 = vld [vmem:[%s2992_s3 + $0x18] sm:$0xff]  ;;  %v469_v5 = vsel %vm468_vm8, %v1716_v55, %v2693_v54 }
 0x15b   : > { %v1378_v10 = vpack.c.bf16 %v393_v8, %v374_v9  ;;  %1377 = vmatprep.subr.bf16.mxu0 %v1376_v6  ;;  %v1764_v11 = vpop.permute.xlu1 %1763  ;;  %1431 = vmatpush1.bf16.msra.mxu1 %v1430_v7 }
 0x15c   : > { %v1766_v12 = vunpack.i.h.bf16 %v1764_v11  ;;  %v1765_v14 = vunpack.i.l.bf16 %v1764_v11  ;;  %927 = vperm.xlu0 %1963, %v915_v24  }
 0x15d   : > { %v1759_v13 = vpop.permute.xlu0 %1758  ;;  %1379 = vmatpush1.bf16.msra.mxu0 %v1378_v10  ;;  %937 = vperm.xlu1 %1962, %v917_v52  }
 0x15e   : > { %v1761_v15 = vunpack.i.h.bf16 %v1759_v13  ;;  %v1760_v18 = vunpack.i.l.bf16 %v1759_v13  ;;  %v415_v21 = vsel %vm411_vm0, %v1765_v14, %v1766_v12 }
 0x15f   : > { %v1774_v16 = vpop.permute.xlu1 %1773 }
 0x160   : > { %v1776_v19 = vunpack.i.h.bf16 %v1774_v16  ;;  %v1775_v20 = vunpack.i.l.bf16 %v1774_v16  ;;  %v413_v32 = vsel %vm411_vm0, %v1760_v18, %v1761_v15  ;;  %v414_v34 = vsel %vm411_vm0, %v1761_v15, %v1765_v14  ;;  %942 = vperm.xlu0 %1963, %v918_v41  }
 0x161   : > { %v1769_v22 = vpop.permute.xlu0 %1768  ;;  %947 = vperm.xlu1 %1962, %v919_v4  }
 0x162   : > { %v1771_v25 = vunpack.i.h.bf16 %v1769_v22  ;;  %v1770_v26 = vunpack.i.l.bf16 %v1769_v22  ;;  %v434_v27 = vsel %vm430_vm15, %v1775_v20, %v1776_v19 }
 0x163   : > { %v421_v30 = vpop.permute.xlu1 %420  ;;  %v1432_v31 = vpack.c.bf16 %v434_v27, %v415_v21 }
 0x164   : > { %v432_v33 = vsel %vm430_vm15, %v1770_v26, %v1771_v25  ;;  %v433_v35 = vsel %vm430_vm15, %v1771_v25, %v1775_v20  ;;  %v431_v42 = vsel %vm430_vm15, %v421_v30, %v1770_v26 }
 0x165   : > { %v402_v36 = vpop.permute.xlu0 %401  ;;  %1433 = vmatprep.subr.bf16.mxu1 %v1432_v31  ;;  %v1380_v37 = vpack.c.bf16 %v432_v33, %v413_v32  ;;  %v1434_v38 = vpack.c.bf16 %v433_v35, %v414_v34 }
 0x166   : > { %v412_v44 = vsel %vm411_vm0, %v402_v36, %v1760_v18 }
 0x167   : > { %v1382_v45 = vpack.c.bf16 %v431_v42, %v412_v44  ;;  %1381 = vmatprep.subr.bf16.mxu0 %v1380_v37  ;;  %v1784_v47 = vpop.permute.xlu1 %1783  ;;  %1435 = vmatpush1.bf16.msra.mxu1 %v1434_v38 }
 0x168   : > { %v1786_v48 = vunpack.i.h.bf16 %v1784_v47  ;;  %v1785_v49 = vunpack.i.l.bf16 %v1784_v47 }
 0x169   : > { %v1779_v50 = vpop.permute.xlu0 %1778  ;;  %1383 = vmatpush1.bf16.msra.mxu0 %v1382_v45 }
 0x16a   : > { %v1781_v56 = vunpack.i.h.bf16 %v1779_v50  ;;  %v1780_v57 = vunpack.i.l.bf16 %v1779_v50  ;;  %v453_v58 = vsel %vm449_vm1, %v1785_v49, %v1786_v48 }
 0x16b   : > { %v1789_v59 = vpop.permute.xlu1 %1788  ;;  %v1436_v60 = vpack.c.bf16 %v2726_v17, %v453_v58 }
 0x16c   : > { %v1791_v61 = vunpack.i.h.bf16 %v1789_v59  ;;  %v1790_v62 = vunpack.i.l.bf16 %v1789_v59  ;;  %v451_v1 = vsel %vm449_vm1, %v1780_v57, %v1781_v56  ;;  %v452_v53 = vsel %vm449_vm1, %v1781_v56, %v1785_v49 }
 0x16d   : > { %v440_v2 = vpop.permute.xlu0 %439  ;;  %1437 = vmatprep.subr.bf16.mxu1 %v1436_v60  ;;  %v1384_v3 = vpack.c.bf16 %v2706_v63, %v451_v1  ;;  %v1438_v46 = vpack.c.bf16 %v2709_v0, %v452_v53 }
 0x16e   : > { %v450_v17 = vsel %vm449_vm1, %v440_v2, %v1780_v57  ;;  %v508_v6 = vsel %vm506_vm2, %v1790_v62, %v1791_v61 }
 0x16f   : > { %v1386_v7 = vpack.c.bf16 %v469_v5, %v450_v17  ;;  %v478_v8 = vpop.permute.xlu1 %477  ;;  %1385 = vmatprep.subr.bf16.mxu0 %v1384_v3  ;;  %1439 = vmatpush1.bf16.msra.mxu1 %v1438_v46  ;;  %v1388_v9 = vpack.c.bf16 %v508_v6, %v2751_v43 }
 0x170   : > { %v488_v43 = vsel %vm487_vm10, %v478_v8, %v2680_v40 }
 0x171   : > { %v1794_v63 = vpop.permute.xlu0 %1793  ;;  %1387 = vmatpush1.bf16.msra.mxu0 %v1386_v7 }
 0x172   : > { %v1796_v0 = vunpack.i.h.bf16 %v1794_v63  ;;  %v1795_v10 = vunpack.i.l.bf16 %v1794_v63  ;;  %1389 = vmatprep.subr.bf16.mxu0 %v1388_v9 }
 0x173   : > { %v1799_v11 = vpop.permute.xlu1 %1798 }
 0x174   : > { %v1801_v12 = vunpack.i.h.bf16 %v1799_v11  ;;  %v1800_v13 = vunpack.i.l.bf16 %v1799_v11  ;;  %v510_v14 = vsel %vm506_vm2, %v1795_v10, %v1796_v0  ;;  %v509_v54 = vsel %vm506_vm2, %v1791_v61, %v1795_v10 }
 0x175   : > { %v497_v15 = vpop.permute.xlu0 %496  ;;  %v1440_v16 = vpack.c.bf16 %v510_v14, %v2762_v51  ;;  %v1442_v18 = vpack.c.bf16 %v509_v54, %v2738_v29 }
 0x176   : > { %v507_v19 = vsel %vm506_vm2, %v497_v15, %v1790_v62  ;;  %v527_v24 = vsel %vm525_vm3, %v1800_v13, %v1801_v12 }
 0x177   : > { %v1390_v20 = vpack.c.bf16 %v507_v19, %v488_v43  ;;  %v1809_v21 = vpop.permute.xlu1 %1808  ;;  %1441 = vmatprep.subr.bf16.mxu1 %v1440_v16 }
 0x178   : > { %v1811_v22 = vunpack.i.h.bf16 %v1809_v21  ;;  %v1810_v23 = vunpack.i.l.bf16 %v1809_v21  ;;  %1443 = vmatpush1.bf16.msra.mxu1 %v1442_v18 }
 0x179   : > { %v1804_v25 = vpop.permute.xlu0 %1803  ;;  %1391 = vmatpush1.bf16.msra.mxu0 %v1390_v20 }
 0x17a   : > { %v546_v51 = vsel %vm544_vm4, %v1810_v23, %v1811_v22  ;;  %v1806_v29 = vunpack.i.h.bf16 %v1804_v25  ;;  %v1805_v26 = vunpack.i.l.bf16 %v1804_v25 }
 0x17b   : > { %v516_v27 = vpop.permute.xlu1 %515  ;;  %v1392_v28 = vpack.c.bf16 %v546_v51, %v527_v24 }
 0x17c   : > { %v529_v33 = vsel %vm525_vm3, %v1805_v26, %v1806_v29  ;;  %v528_v34 = vsel %vm525_vm3, %v1801_v12, %v1805_v26  ;;  %v526_v44 = vsel %vm525_vm3, %v516_v27, %v1800_v13 }
 0x17d   : > { %v1814_v40 = vpop.permute.xlu0 %1813  ;;  %1393 = vmatprep.subr.bf16.mxu0 %v1392_v28 }
 0x17e   : > { %v1816_v30 = vunpack.i.h.bf16 %v1814_v40  ;;  %v1815_v31 = vunpack.i.l.bf16 %v1814_v40 }
 0x17f   : > { %v1819_v32 = vpop.permute.xlu1 %1818 }
 0x180   : > { %v1821_v35 = vunpack.i.h.bf16 %v1819_v32  ;;  %v1820_v36 = vunpack.i.l.bf16 %v1819_v32  ;;  %v548_v37 = vsel %vm544_vm4, %v1815_v31, %v1816_v30  ;;  %v547_v38 = vsel %vm544_vm4, %v1811_v22, %v1815_v31 }
 0x181   : > { %v535_v39 = vpop.permute.xlu0 %534  ;;  %v1444_v41 = vpack.c.bf16 %v548_v37, %v529_v33  ;;  %v1446_v42 = vpack.c.bf16 %v547_v38, %v528_v34 }
 0x182   : > { %v545_v45 = vsel %vm544_vm4, %v535_v39, %v1810_v23  ;;  %v565_v52 = vsel %vm563_vm5, %v1820_v36, %v1821_v35 }
 0x183   : > { %v1394_v47 = vpack.c.bf16 %v545_v45, %v526_v44  ;;  %v1829_v48 = vpop.permute.xlu1 %1828  ;;  %1445 = vmatprep.subr.bf16.mxu1 %v1444_v41 }
 0x184   : > { %v1831_v49 = vunpack.i.h.bf16 %v1829_v48  ;;  %v1830_v50 = vunpack.i.l.bf16 %v1829_v48  ;;  %1447 = vmatpush1.bf16.msra.mxu1 %v1446_v42 }
 0x185   : > { %v1824_v55 = vpop.permute.xlu0 %1823  ;;  %1395 = vmatpush1.bf16.msra.mxu0 %v1394_v47 }
 0x186   : > { %v584_v56 = vsel %vm582_vm6, %v1830_v50, %v1831_v49  ;;  %v1826_v57 = vunpack.i.h.bf16 %v1824_v55  ;;  %v1825_v58 = vunpack.i.l.bf16 %v1824_v55 }
 0x187   : > { %v554_v59 = vpop.permute.xlu1 %553  ;;  %v1396_v60 = vpack.c.bf16 %v584_v56, %v565_v52 }
 0x188   : > { %v567_v2 = vsel %vm563_vm5, %v1825_v58, %v1826_v57  ;;  %v566_v3 = vsel %vm563_vm5, %v1821_v35, %v1825_v58  ;;  %v564_v9 = vsel %vm563_vm5, %v554_v59, %v1820_v36 }
 0x189   : > { %v1834_v61 = vpop.permute.xlu0 %1833  ;;  %1397 = vmatprep.subr.bf16.mxu0 %v1396_v60 }
 0x18a   : > { %v1836_v62 = vunpack.i.h.bf16 %v1834_v61  ;;  %v1835_v1 = vunpack.i.l.bf16 %v1834_v61 }
 0x18b   : > { %v1839_v53 = vpop.permute.xlu1 %1838 }
 0x18c   : > { %v1841_v46 = vunpack.i.h.bf16 %v1839_v53  ;;  %v1840_v4 = vunpack.i.l.bf16 %v1839_v53  ;;  %v586_v17 = vsel %vm582_vm6, %v1835_v1, %v1836_v62  ;;  %v585_v5 = vsel %vm582_vm6, %v1831_v49, %v1835_v1 }
 0x18d   : > { %v573_v6 = vpop.permute.xlu0 %572  ;;  %v1448_v7 = vpack.c.bf16 %v586_v17, %v567_v2  ;;  %v1450_v8 = vpack.c.bf16 %v585_v5, %v566_v3 }
 0x18e   : > { %v583_v63 = vsel %vm582_vm6, %v573_v6, %v1830_v50  ;;  %v815_v13 = vsel %vm813_vm7, %v1840_v4, %v1841_v46 }
 0x18f   : > { %v1398_v0 = vpack.c.bf16 %v583_v63, %v564_v9  ;;  %v1849_v10 = vpop.permute.xlu1 %1848  ;;  %1449 = vmatprep.subr.bf16.mxu1 %v1448_v7 }
 0x190   : > { %v1851_v11 = vunpack.i.h.bf16 %v1849_v10  ;;  %v1850_v12 = vunpack.i.l.bf16 %v1849_v10  ;;  %1451 = vmatpush1.bf16.msra.mxu1 %v1450_v8 }
 0x191   : > { %v1844_v14 = vpop.permute.xlu0 %1843  ;;  %1399 = vmatpush1.bf16.msra.mxu0 %v1398_v0 }
 0x192   : > { %v819_v54 = vsel %vm813_vm7, %v1850_v12, %v1851_v11  ;;  %v1846_v18 = vunpack.i.h.bf16 %v1844_v14  ;;  %v1845_v43 = vunpack.i.l.bf16 %v1844_v14 }
 0x193   : > { %v1859_v15 = vpop.permute.xlu1 %1858  ;;  %v1400_v16 = vpack.c.bf16 %v819_v54, %v815_v13 }
 0x194   : > { %v1861_v19 = vunpack.i.h.bf16 %v1859_v15  ;;  %v1860_v20 = vunpack.i.l.bf16 %v1859_v15  ;;  %v817_v26 = vsel %vm813_vm7, %v1845_v43, %v1846_v18  ;;  %v816_v28 = vsel %vm813_vm7, %v1841_v46, %v1845_v43 }
 0x195   : > { %v1854_v21 = vpop.permute.xlu0 %1853  ;;  %1401 = vmatprep.subr.bf16.mxu0 %v1400_v16 }
 0x196   : > { %v1856_v22 = vunpack.i.h.bf16 %v1854_v21  ;;  %v1855_v23 = vunpack.i.l.bf16 %v1854_v21  ;;  %v814_v24 = vsel %vm813_vm7, %v1860_v20, %v1840_v4  ;;  %v818_v25 = vsel %vm813_vm7, %v1861_v19, %v1850_v12 }
 0x197   : > { %v1869_v51 = vpop.permute.xlu1 %1868  ;;  %v1402_v29 = vpack.c.bf16 %v818_v25, %v814_v24 }
 0x198   : > { %v821_v27 = vsel %vm813_vm7, %v1855_v23, %v1856_v22  ;;  %v820_v40 = vsel %vm813_vm7, %v1851_v11, %v1855_v23  ;;  %v1871_v33 = vunpack.i.h.bf16 %v1869_v51  ;;  %v1870_v34 = vunpack.i.l.bf16 %v1869_v51 }
 0x199   : > { %1403 = vmatpush1.bf16.msra.mxu0 %v1402_v29  ;;  %v1864_v30 = vpop.permute.xlu0 %1863  ;;  %v1452_v31 = vpack.c.bf16 %v821_v27, %v817_v26  ;;  %v1454_v32 = vpack.c.bf16 %v820_v40, %v816_v28 }
 0x19a   : > { %v1866_v36 = vunpack.i.h.bf16 %v1864_v30  ;;  %v1865_v37 = vunpack.i.l.bf16 %v1864_v30  ;;  %v825_v45 = vsel %vm813_vm7, %v1870_v34, %v1871_v33 }
 0x19b   : > { %1453 = vmatprep.subr.bf16.mxu1 %v1452_v31  ;;  %v1879_v35 = vpop.permute.xlu1 %1878 }
 0x19c   : > { %v1881_v38 = vunpack.i.h.bf16 %v1879_v35  ;;  %v1880_v39 = vunpack.i.l.bf16 %v1879_v35  ;;  %1455 = vmatpush1.bf16.msra.mxu1 %v1454_v32  ;;  %v823_v50 = vsel %vm813_vm7, %v1865_v37, %v1866_v36  ;;  %v824_v55 = vsel %vm813_vm7, %v1866_v36, %v1870_v34 }
 0x19d   : > { %v1874_v41 = vpop.permute.xlu0 %1873 }
 0x19e   : > { %v1876_v42 = vunpack.i.h.bf16 %v1874_v41  ;;  %v1875_v44 = vunpack.i.l.bf16 %v1874_v41  ;;  %v829_v47 = vsel %vm813_vm7, %v1880_v39, %v1881_v38 }
 0x19f   : > { %v1889_v48 = vpop.permute.xlu1 %1888  ;;  %v1456_v49 = vpack.c.bf16 %v829_v47, %v825_v45 }
 0x1a0   : > { %v827_v52 = vsel %vm813_vm7, %v1875_v44, %v1876_v42  ;;  %v828_v56 = vsel %vm813_vm7, %v1876_v42, %v1880_v39  ;;  %v1891_v60 = vunpack.i.h.bf16 %v1889_v48  ;;  %v1890_v61 = vunpack.i.l.bf16 %v1889_v48 }
 0x1a1   : > { %1457 = vmatprep.subr.bf16.mxu1 %v1456_v49  ;;  %v1884_v57 = vpop.permute.xlu0 %1883  ;;  %v1404_v58 = vpack.c.bf16 %v827_v52, %v823_v50  ;;  %v1458_v59 = vpack.c.bf16 %v828_v56, %v824_v55 }
 0x1a2   : > { %v1886_v62 = vunpack.i.h.bf16 %v1884_v57  ;;  %v1885_v1 = vunpack.i.l.bf16 %v1884_v57  ;;  %v831_v6 = vsel %vm813_vm7, %v1890_v61, %v1891_v60 }
 0x1a3   : > { %v1899_v53 = vpop.permute.xlu1 %1898  ;;  %1405 = vmatprep.subr.bf16.mxu0 %v1404_v58  ;;  %1459 = vmatpush1.bf16.msra.mxu1 %v1458_v59 }
 0x1a4   : > { %v1901_v2 = vunpack.i.h.bf16 %v1899_v53  ;;  %v1900_v3 = vunpack.i.l.bf16 %v1899_v53  ;;  %v822_v46 = vsel %vm813_vm7, %v1885_v1, %v1865_v37  ;;  %v826_v4 = vsel %vm813_vm7, %v1886_v62, %v1875_v44 }
 0x1a5   : > { %v1894_v17 = vpop.permute.xlu0 %1893  ;;  %v1406_v5 = vpack.c.bf16 %v826_v4, %v822_v46 }
 0x1a6   : > { %v835_v7 = vsel %vm813_vm7, %v1900_v3, %v1901_v2  ;;  %v1896_v63 = vunpack.i.h.bf16 %v1894_v17  ;;  %v1895_v0 = vunpack.i.l.bf16 %v1894_v17 }
 0x1a7   : > { %v1909_v8 = vpop.permute.xlu1 %1908  ;;  %1407 = vmatpush1.bf16.msra.mxu0 %v1406_v5  ;;  %v1408_v9 = vpack.c.bf16 %v835_v7, %v831_v6 }
 0x1a8   : > { %v1911_v10 = vunpack.i.h.bf16 %v1909_v8  ;;  %v1910_v11 = vunpack.i.l.bf16 %v1909_v8  ;;  %v833_v43 = vsel %vm813_vm7, %v1895_v0, %v1896_v63  ;;  %v832_v20 = vsel %vm813_vm7, %v1891_v60, %v1895_v0 }
 0x1a9   : > { %v1904_v12 = vpop.permute.xlu0 %1903  ;;  %1409 = vmatprep.subr.bf16.mxu0 %v1408_v9 }
 0x1aa   : > { %v1906_v13 = vunpack.i.h.bf16 %v1904_v12  ;;  %v1905_v14 = vunpack.i.l.bf16 %v1904_v12  ;;  %v830_v54 = vsel %vm813_vm7, %v1910_v11, %v1890_v61  ;;  %v834_v15 = vsel %vm813_vm7, %v1911_v10, %v1900_v3 }
 0x1ab   : > { %v1919_v16 = vpop.permute.xlu1 %1918  ;;  %v1410_v18 = vpack.c.bf16 %v834_v15, %v830_v54 }
 0x1ac   : > { %v837_v19 = vsel %vm813_vm7, %v1905_v14, %v1906_v13  ;;  %v836_v21 = vsel %vm813_vm7, %v1901_v2, %v1905_v14  ;;  %v1921_v25 = vunpack.i.h.bf16 %v1919_v16  ;;  %v1920_v51 = vunpack.i.l.bf16 %v1919_v16 }
 0x1ad   : > { %v1914_v22 = vpop.permute.xlu0 %1913  ;;  %1411 = vmatpush1.bf16.msra.mxu0 %v1410_v18  ;;  %v1460_v23 = vpack.c.bf16 %v837_v19, %v833_v43  ;;  %v1462_v24 = vpack.c.bf16 %v836_v21, %v832_v20  ;;  %v902_v20 = vld [vmem:[#allocation7] sm:$0xff]  ;;  %v905_v21 = vld [vmem:[#allocation7 + $0x18] sm:$0xff] }
 0x1ae   : > { %v1916_v26 = vunpack.i.h.bf16 %v1914_v22  ;;  %v1915_v27 = vunpack.i.l.bf16 %v1914_v22  ;;  %v841_v33 = vsel %vm813_vm7, %v1920_v51, %v1921_v25  ;;  %v907_v25 = vld [vmem:[#allocation7 + $0x28] sm:$0xff] }
 0x1af   : > { %v1929_v29 = vpop.permute.xlu1 %1928  ;;  %1461 = vmatprep.subr.bf16.mxu1 %v1460_v23 }
 0x1b0   : > { %v1931_v28 = vunpack.i.h.bf16 %v1929_v29  ;;  %v1930_v40 = vunpack.i.l.bf16 %v1929_v29  ;;  %1463 = vmatpush1.bf16.msra.mxu1 %v1462_v24  ;;  %v839_v37 = vsel %vm813_vm7, %v1915_v27, %v1916_v26  ;;  %v840_v39 = vsel %vm813_vm7, %v1916_v26, %v1920_v51  ;;  %v904_v24 = vld [vmem:[#allocation7 + $0x10] sm:$0xff]  ;;  %v906_v51 = vld [vmem:[#allocation7 + $0x20] sm:$0xff]  ;;  %v909_v29 = vld [vmem:[#allocation7 + $0x38] sm:$0xff] }
 0x1b1   : > { %v1924_v30 = vpop.permute.xlu0 %1923  ;;  %v908_v26 = vld [vmem:[#allocation7 + $0x30] sm:$0xff] }
 0x1b2   : > { %v1926_v31 = vunpack.i.h.bf16 %v1924_v30  ;;  %v1925_v32 = vunpack.i.l.bf16 %v1924_v30  ;;  %v845_v34 = vsel %vm813_vm7, %v1930_v40, %v1931_v28  ;;  %v910_v28 = vld [vmem:[#allocation7 + $0x40] sm:$0xff]  ;;  %v912_v30 = vld [vmem:[#allocation7 + $0x50] sm:$0xff] }
 0x1b3   : > { %v1939_v35 = vpop.permute.xlu1 %1938  ;;  %v1464_v36 = vpack.c.bf16 %v845_v34, %v841_v33 }
 0x1b4   : > { %v843_v38 = vsel %vm813_vm7, %v1925_v32, %v1926_v31  ;;  %v844_v41 = vsel %vm813_vm7, %v1926_v31, %v1930_v40  ;;  %v1941_v47 = vunpack.i.h.bf16 %v1939_v35  ;;  %v1940_v48 = vunpack.i.l.bf16 %v1939_v35  ;;  %v913_v40 = vld [vmem:[#allocation7 + $0x58] sm:$0xff] }
 0x1b5   : > { %v1934_v42 = vpop.permute.xlu0 %1933  ;;  %1465 = vmatprep.subr.bf16.mxu1 %v1464_v36  ;;  %v1412_v44 = vpack.c.bf16 %v843_v38, %v839_v37  ;;  %v1466_v45 = vpack.c.bf16 %v844_v41, %v840_v39 }
 0x1b6   : > { %v1936_v49 = vunpack.i.h.bf16 %v1934_v42  ;;  %v1935_v50 = vunpack.i.l.bf16 %v1934_v42  ;;  %v847_v61 = vsel %vm813_vm7, %v1940_v48, %v1941_v47 }
 0x1b7   : > { %v1949_v52 = vpop.permute.xlu1 %1948  ;;  %1413 = vmatprep.subr.bf16.mxu0 %v1412_v44  ;;  %1467 = vmatpush1.bf16.msra.mxu1 %v1466_v45 }
 0x1b8   : > { %v1951_v55 = vunpack.i.h.bf16 %v1949_v52  ;;  %v1950_v56 = vunpack.i.l.bf16 %v1949_v52  ;;  %v838_v57 = vsel %vm813_vm7, %v1935_v50, %v1915_v27  ;;  %v842_v58 = vsel %vm813_vm7, %v1936_v49, %v1925_v32  ;;  %v911_v27 = vld [vmem:[#allocation7 + $0x48] sm:$0xff] }
 0x1b9   : > { %v1944_v59 = vpop.permute.xlu0 %1943  ;;  %v1414_v60 = vpack.c.bf16 %v842_v58, %v838_v57 }
 0x1ba   : > { %v851_v62 = vsel %vm813_vm7, %v1950_v56, %v1951_v55  ;;  %v1946_v2 = vunpack.i.h.bf16 %v1944_v59  ;;  %v1945_v3 = vunpack.i.l.bf16 %v1944_v59 }
 0x1bb   : > { %v1959_v1 = vpop.permute.xlu1 %1958  ;;  %1415 = vmatpush1.bf16.msra.mxu0 %v1414_v60  ;;  %v1416_v53 = vpack.c.bf16 %v851_v62, %v847_v61 }
 0x1bc   : > { %v1961_v46 = vunpack.i.h.bf16 %v1959_v1  ;;  %v1960_v4 = vunpack.i.l.bf16 %v1959_v1  ;;  %v849_v0 = vsel %vm813_vm7, %v1945_v3, %v1946_v2  ;;  %v848_v11 = vsel %vm813_vm7, %v1941_v47, %v1945_v3 }
 0x1bd   : > { %v1954_v17 = vpop.permute.xlu0 %1953  ;;  %1417 = vmatprep.subr.bf16.mxu0 %v1416_v53 }
 0x1be   : > { %v1956_v5 = vunpack.i.h.bf16 %v1954_v17  ;;  %v1955_v6 = vunpack.i.l.bf16 %v1954_v17  ;;  %v846_v7 = vsel %vm813_vm7, %v1960_v4, %v1940_v48  ;;  %v850_v8 = vsel %vm813_vm7, %v1961_v46, %v1950_v56 }
 0x1bf   : > { %v1418_v9 = vpack.c.bf16 %v850_v8, %v846_v7  ;;  %v808_v63 = vpop.permute.xlu1 %807 }
 0x1c0   : > { %v853_v10 = vsel %vm813_vm7, %v1955_v6, %v1956_v5  ;;  %v852_v12 = vsel %vm813_vm7, %v1951_v55, %v1955_v6 }
 0x1c1   : > { %1419 = vmatpush1.bf16.msra.mxu0 %v1418_v9  ;;  %v1468_v13 = vpack.c.bf16 %v853_v10, %v849_v0  ;;  %v1470_v14 = vpack.c.bf16 %v852_v12, %v848_v11 }
 0x1c2   : > { %v806_v54 = vpop.permute.xlu0 %805 }
 0x1c3   : > { %v855_v15 = vsel %vm813_vm7, %v806_v54, %v808_v63  ;;  %1469 = vmatprep.subr.bf16.mxu1 %v1468_v13  ;;  %v812_v16 = vpop.permute.xlu1 %811 }
 0x1c4   : > { %1021 = vmatprep.subr.mxu0 %v855_v15  ;;  %1471 = vmatpush1.bf16.msra.mxu1 %v1470_v14 }
 0x1c6   : > { %v810_v18 = vpop.permute.xlu0 %809 }
 0x1c7   : > { %v857_v43 = vsel %vm813_vm7, %v810_v18, %v812_v16  ;;  %v856_v19 = vsel %vm813_vm7, %v808_v63, %v810_v18 }
 0x1c8   : > { %1122 = vmatprep.subr.mxu1 %v857_v43 }
 0x1c9   : > { %1123 = vmatpush1.msra.mxu1 %v856_v19 }
 0x1ca   : > { %v804_v22 = vpop.permute.xlu0 %803  ;;  %1135 = vmatmul.mubr.f32.vlgmr.msra.gmra.mrb[0].mxu1 %v902_v20 }
 0x1cb   : > { %v854_v23 = vsel %vm813_vm7, %v804_v22, %v806_v54  ;;  %1359 = vmatprep.mubr.msk.f32.mxu1 %vm950_vm12, %v905_v21 }
 0x1cc   : > { %1022 = vmatpush1.msra.mxu0 %v854_v23 }
 0x1cd   : > { %1034 = vmatmul.mubr.f32.vlgmr.msra.gmra.mrb[0].mxu0 %v902_v20 }
 0x1ce   : > { %1141 = vmatmul.mubr.f32.gmra.mrb[2].mxu1 %v904_v24  ;;  %1353 = vmatprep.mubr.msk.f32.mxu0 %vm950_vm12, %v905_v21 }
 0x1cf   : > { %1360 = vmatprep.mubr.msk.f32.mxu1 %vm950_vm12, %v907_v25 }
 0x1d1   : > { %1040 = vmatmul.mubr.f32.gmra.mrb[2].mxu0 %v904_v24 }
 0x1d2   : > { %1147 = vmatmul.mubr.f32.gmra.mrb[4].mxu1 %v906_v51  ;;  %1354 = vmatprep.mubr.msk.f32.mxu0 %vm950_vm12, %v907_v25 }
 0x1d3   : > { %1361 = vmatprep.mubr.msk.f32.mxu1 %vm950_vm12, %v909_v29 }
 0x1d4   : > { %v923_v31 = vpop.permute.xlu1 %922 }
 0x1d5   : > { %1046 = vmatmul.mubr.f32.gmra.mrb[4].mxu0 %v906_v51 }
 0x1d6   : > { %1153 = vmatmul.mubr.f32.gmra.mrb[6].mxu1 %v908_v26  ;;  %1355 = vmatprep.mubr.msk.f32.mxu0 %vm950_vm12, %v909_v29 }
 0x1d7   : > { %1362 = vmatprep.mubr.msk.f32.mxu1 %vm950_vm12, %v911_v27 }
 0x1d8   : > { %v933_v42 = vpop.permute.xlu1 %932 }
 0x1d9   : > { %1052 = vmatmul.mubr.f32.gmra.mrb[6].mxu0 %v908_v26 }
 0x1da   : > { %1159 = vmatmul.mubr.f32.gmra.mrb[8].mxu1 %v910_v28  ;;  %1356 = vmatprep.mubr.msk.f32.mxu0 %vm950_vm12, %v911_v27 }
 0x1db   : > { %1363 = vmatprep.mubr.msk.f32.mxu1 %vm950_vm12, %v913_v40  ;;  %v928_v36 = vpop.permute.xlu0 %927 }
 0x1dc   : > { %v938_v60 = vpop.permute.xlu1 %937 }
 0x1dd   : > { %1058 = vmatmul.mubr.f32.gmra.mrb[8].mxu0 %v910_v28 }
 0x1de   : > { %1165 = vmatmul.mubr.f32.gmra.mrb[10].mxu1 %v912_v30  ;;  %1357 = vmatprep.mubr.msk.f32.mxu0 %vm950_vm12, %v913_v40 }
 0x1df   : > { %v943_v17 = vpop.permute.xlu0 %942 }
 0x1e0   : > { %v948_v11 = vpop.permute.xlu1 %947 }
 0x1e1   : > { %1064 = vmatmul.mubr.f32.gmra.mrb[10].mxu0 %v912_v30 }
 0x29d   : > { %v1136_v32 = vpop.f32.mrb[0].mxu1 }
 0x29e   : > { %v1137_v33 = vadd.f32 %v1136_v32, %v923_v31  ;;  %v1138_v34 = vpop.f32.mrb[1].mxu1 }
 0x29f   : > { %v1139_v35 = vadd.f32 %v1138_v34, %v923_v31 }
 0x2a0   : > { %1173 = vst [vmem:[%s2892_s12 + $0x10] sm:$0xff] %v1137_v33  ;;  %v1035_v37 = vpop.f32.mrb[0].mxu0 }
 0x2a1   : > { %v1036_v38 = vadd.f32 %v1035_v37, %v923_v31  ;;  %1174 = vst [vmem:[%s2892_s12 + $0x18] sm:$0xff] %v1139_v35  ;;  %v1037_v39 = vpop.f32.mrb[1].mxu0  ;;  %v1142_v41 = vpop.f32.mrb[2].mxu1 }
 0x2a2   : > { %v1038_v44 = vadd.f32 %v1037_v39, %v923_v31  ;;  %v1143_v45 = vadd.f32 %v1142_v41, %v928_v36  ;;  %v1144_v47 = vpop.f32.mrb[3].mxu1 }
 0x2a3   : > { %1171 = vst [vmem:[%s2892_s12] sm:$0xff] %v1036_v38  ;;  %v1145_v48 = vadd.f32 %v1144_v47, %v928_v36 }
 0x2a4   : > { %1172 = vst [vmem:[%s2892_s12 + $0x8] sm:$0xff] %v1038_v44  ;;  %1177 = vst [vmem:[%s2892_s12 + $0x30] sm:$0xff] %v1143_v45  ;;  %v1041_v49 = vpop.f32.mrb[2].mxu0 }
 0x2a5   : > { %v1042_v50 = vadd.f32 %v1041_v49, %v928_v36  ;;  %1178 = vst [vmem:[%s2892_s12 + $0x38] sm:$0xff] %v1145_v48  ;;  %v1043_v52 = vpop.f32.mrb[3].mxu0  ;;  %v1148_v55 = vpop.f32.mrb[4].mxu1 }
 0x2a6   : > { %v1044_v56 = vadd.f32 %v1043_v52, %v928_v36  ;;  %v1149_v57 = vadd.f32 %v1148_v55, %v933_v42  ;;  %v1150_v58 = vpop.f32.mrb[5].mxu1 }
 0x2a7   : > { %1175 = vst [vmem:[%s2892_s12 + $0x20] sm:$0xff] %v1042_v50  ;;  %v1151_v59 = vadd.f32 %v1150_v58, %v933_v42 }
 0x2a8   : > { %1176 = vst [vmem:[%s2892_s12 + $0x28] sm:$0xff] %v1044_v56  ;;  %1181 = vst [vmem:[%s2892_s12 + $0x50] sm:$0xff] %v1149_v57  ;;  %v1047_v61 = vpop.f32.mrb[4].mxu0 }
 0x2a9   : > { %v1048_v62 = vadd.f32 %v1047_v61, %v933_v42  ;;  %1182 = vst [vmem:[%s2892_s12 + $0x58] sm:$0xff] %v1151_v59  ;;  %v1049_v1 = vpop.f32.mrb[5].mxu0  ;;  %v1154_v53 = vpop.f32.mrb[6].mxu1 }
 0x2aa   : > { %v1050_v2 = vadd.f32 %v1049_v1, %v933_v42  ;;  %v1155_v3 = vadd.f32 %v1154_v53, %v938_v60  ;;  %v1156_v46 = vpop.f32.mrb[7].mxu1 }
 0x2ab   : > { %1179 = vst [vmem:[%s2892_s12 + $0x40] sm:$0xff] %v1048_v62  ;;  %v1157_v4 = vadd.f32 %v1156_v46, %v938_v60 }
 0x2ac   : > { %1180 = vst [vmem:[%s2892_s12 + $0x48] sm:$0xff] %v1050_v2  ;;  %1185 = vst [vmem:[%s2892_s12 + $0x70] sm:$0xff] %v1155_v3  ;;  %v1053_v5 = vpop.f32.mrb[6].mxu0 }
 0x2ad   : > { %1186 = vst [vmem:[%s2892_s12 + $0x78] sm:$0xff] %v1157_v4  ;;  %v1054_v6 = vadd.f32 %v1053_v5, %v938_v60  ;;  %v1055_v7 = vpop.f32.mrb[7].mxu0  ;;  %v1160_v8 = vpop.f32.mrb[8].mxu1 }
 0x2ae   : > { %v1056_v9 = vadd.f32 %v1055_v7, %v938_v60  ;;  %v1161_v63 = vadd.f32 %v1160_v8, %v943_v17  ;;  %v1162_v0 = vpop.f32.mrb[9].mxu1 }
 0x2af   : > { %1183 = vst [vmem:[%s2892_s12 + $0x60] sm:$0xff] %v1054_v6  ;;  %v1163_v10 = vadd.f32 %v1162_v0, %v943_v17 }
 0x2b0   : > { %1184 = vst [vmem:[%s2892_s12 + $0x68] sm:$0xff] %v1056_v9  ;;  %1189 = vst [vmem:[%s2892_s12 + $0x90] sm:$0xff] %v1161_v63  ;;  %v1059_v12 = vpop.f32.mrb[8].mxu0 }
 0x2b1   : > { %v1060_v13 = vadd.f32 %v1059_v12, %v943_v17  ;;  %1190 = vst [vmem:[%s2892_s12 + $0x98] sm:$0xff] %v1163_v10  ;;  %v1061_v14 = vpop.f32.mrb[9].mxu0  ;;  %v1166_v54 = vpop.f32.mrb[10].mxu1 }
 0x2b2   : > { %v1062_v15 = vadd.f32 %v1061_v14, %v943_v17  ;;  %v1167_v16 = vadd.f32 %v1166_v54, %v948_v11  ;;  %v1168_v18 = vpop.f32.mrb[11].mxu1 }
 0x2b3   : > { %1187 = vst [vmem:[%s2892_s12 + $0x80] sm:$0xff] %v1060_v13  ;;  %v1169_v43 = vadd.f32 %v1168_v18, %v948_v11 }
 0x2b4   : > { %1188 = vst [vmem:[%s2892_s12 + $0x88] sm:$0xff] %v1062_v15  ;;  %1193 = vst [vmem:[%s2892_s12 + $0xb0] sm:$0xff] %v1167_v16  ;;  %v1065_v19 = vpop.f32.mrb[10].mxu0 }
 0x2b5   : > { %1194 = vst [vmem:[%s2892_s12 + $0xb8] sm:$0xff] %v1169_v43  ;;  %v1066_v20 = vadd.f32 %v1065_v19, %v948_v11  ;;  %v1067_v21 = vpop.f32.mrb[11].mxu0 }
 0x2b6   : > { %v1068_v22 = vadd.f32 %v1067_v21, %v948_v11 }
 0x2b7   : > { %1191 = vst [vmem:[%s2892_s12 + $0xa0] sm:$0xff] %v1066_v20 }
 0x2b8   : > { %1192 = vst [vmem:[%s2892_s12 + $0xa8] sm:$0xff] %v1068_v22 }
 0x2b9   : > { %2066 = shalt.err (!%p2063_p13)
}
 0x2ba   : > { %s2067_s13 = scalar_lea.hbm %s2921_s11, 3072  ;;  %s2071_s6 = scalar_lea.hbm %s3038_s30, 12288 }
 0x2bb   : > { %p2068_p4 = scmp.ne.s32.totalorder %s2921_s11, %s2067_s13  ;;  %p2072_p5 = scmp.lt.u32.totalorder %s2921_s11, %s3038_s30 }
 0x2bc   : > { %p2073_p3 = scmp.lt.u32.totalorder %s2071_s6, %s2067_s13  ;;  %p2075_p9 = scmp.lt.u32.totalorder %s2067_s13, %s2921_s11 }
 0x2bd   : > { %p2069_p6 = pnand %p2068_p4, %p3039_p12 }
 0x2be   : > { %p2074_p11 = por %p2073_p3, %p2072_p5 }
 0x2bf   : > { %p2070_p10 = pneg %p2069_p6 }
 0x2c0   : > { %p2076_p1 = por %p2075_p9, %p2074_p11 }
 0x2c2   : > { %p2077_p7 = pnand %p2076_p1, %p2070_p10 }
 0x2c4   : > { %2080 = shalt.err (!%p2077_p7)
}
 0x2c5   : > { %s2215_s8 = smov 512   ;;  %s2216_s21 = smov 1024  }
 0x2c6   : > { %s2217_s28 = smov 32  }
 0x2c7   : > { %1483 = dma.vmem_to_hbm [thread:$0]  (%p3039_p12), %s2924_s23, 3072, %s2921_s11, %s1196_s9, %s2215_s8, %s2216_s21, %s2217_s28  }
 0x2c8 PF: > { %p1503_p0 = scmp.ge.s32.totalorder %s2183_s25, 2  ;;  %s1226_s24 = sand.u32 1, %s2155_s18  }
 0x2c9   : > { %p3040_p2 = scmp.ne.s32.totalorder %s3024_s7, 0  ;;  %s1227_s14 = scalar_lea.sflag [#allocation4], %s1226_s24 }
 0x2cb   : > { %p1497_p8 = pnand %p1503_p0, %p3040_p2 }
 0x2cd   : > { %2138 = dma.done.wait (!%p1497_p8), %s1227_s14, 3072  }
 0x2ce   : > { %2140 = vsyncadd (!%p1497_p8), %s1227_s14, 4294964224  ;;  %s23_s25 = sadd.s32 1, %s2183_s25   ;;  %s3041_s4 = sld [smem:[#allocation19_spill]] }
 0x2cf   : > { %p20_p13 = scmp.ge.s32.totalorder %s23_s25, 6   ;;  %s3042_s21 = sld [smem:[#allocation14_spill]] }
 0x2d0   : > { %s3043_s22 = sld [smem:[#allocation15_spill]]  ;;  %s3044_s23 = sld [smem:[#allocation16_spill]] }
 0x2d1   : > { %s3045_s24 = sld [smem:[#allocation17_spill]]  ;;  %s3046_s15 = smov %s2147_s16 }
 0x2d2   : > { %s3047_s16 = smov %s2151_s17  ;;  %s3048_s17 = smov %s2444_s2 }
 0x2d3   : > { %s3049_s18 = smov %s2159_s19  ;;  %s3050_s19 = smov %s2163_s20 }
 0x2d4   : > { %s3051_s20 = smov %s3041_s4  ;;  %22 = sbr.rel (!%p20_p13) target bundleno = 14 (0xe), region = 98 }
 0x2db   :  { %1232 = vsyncpa [#allocation3], 1 }
 0x2dc   :  { %1234 = vsyncpa [#allocation3 + $0x1], 1 }
 0x2dd   :  { %1235 = vsyncpa [#allocation6], 1 }
 0x2de   :  { %1237 = vsyncpa [#allocation6 + $0x1], 1 }
 0x2df   :  { %1238 = vsyncpa [#allocation4], 1 }
 0x2e0   :  { %1240 = vsyncpa [#allocation4 + $0x1], 1 }

</bundles_post_ra>
